<compile_context>
chip_gen: v6e
topology: v6e:2x2x1
jax: 0.10.0
libtpu: 0.0.40
codegen_flags: <defaults>
</compile_context>

<pallas_src>
import numpy as np
import jax
import jax.numpy as jnp
from jax.experimental import pallas as pl
from jax.experimental.pallas import tpu as pltpu

LEAK = 0.2
BN_EPS = 0.8  # nn.BatchNorm2d(out_filters, 0.8): 2nd positional arg is eps.


# ------------------------------ static geometry -----------------------------

def _layer_dims(channels, img_size):
    assert img_size % 16 == 0, "img_size must be divisible by 2**4"
    chs = [channels, 16, 32, 64, 128]
    dims, h = [], img_size
    for i in range(4):
        cin, cout = chs[i], chs[i + 1]
        ho = h // 2
        dims.append(dict(cin=cin, cout=cout, hi=h, wi=h, ho=ho, wo=ho,
                         hp=h + 2, he=(h + 2) // 2, k=h * cin, n=ho * cout))
        h = ho
    return dims


# --------------------------------- kernel -----------------------------------

def _make_kernel(dims):
    HO = [d["ho"] for d in dims]
    HE = [d["he"] for d in dims]

    def conv_block(src_ref, wb_ref, aff_ref, ho, he):
        # src_ref: (Hp, Wi*Cin) f32, parity-row-ordered, H-pad rows are zero.
        # wb_ref : (3, Wi*Cin, Wo*Cout) bf16   (stride-2 conv + W-pad baked in)
        # aff_ref: (3, Wo*Cout) f32            rows: bias / BN scale / BN shift
        a_top = src_ref[pl.ds(0, ho), :].astype(jnp.bfloat16)   # padded rows 2r
        a_mid = src_ref[pl.ds(he, ho), :].astype(jnp.bfloat16)  # padded rows 2r+1
        a_bot = src_ref[pl.ds(1, ho), :].astype(jnp.bfloat16)   # padded rows 2r+2
        y = jnp.dot(a_top, wb_ref[0], preferred_element_type=jnp.float32)
        y = y + jnp.dot(a_mid, wb_ref[1], preferred_element_type=jnp.float32)
        y = y + jnp.dot(a_bot, wb_ref[2], preferred_element_type=jnp.float32)
        aff = aff_ref[...]
        y = y + aff[0:1, :]
        y = jnp.maximum(y, LEAK * y)               # LeakyReLU(0.2)
        # Dropout2d(0.25): identity in eval mode.
        return y * aff[1:2, :] + aff[2:3, :]       # folded eval BatchNorm (or 1/0)

    def scatter_parity(y, dst_ref, ho, he_dst):
        # Write output row r into the next layer's parity-ordered padded buffer at
        # padded row r+1:  odd r  -> buffer rows [1, ho/2+1)   (even padded rows)
        #                  even r -> buffer rows [he, he+ho/2) (odd padded rows)
        # dst_ref was pre-zeroed, so the two H-pad rows stay 0.
        half = ho // 2
        if ho >= 8:
            # Deinterleave even/odd rows with tiny exact 0/1 selector matmuls (MXU is
            # idle) -> only two contiguous slab stores, no masked per-row stores.
            y16 = y.astype(jnp.bfloat16)   # next layer casts to bf16 anyway: bit-identical
            r = jax.lax.broadcasted_iota(jnp.int32, (half, ho), 0)
            c = jax.lax.broadcasted_iota(jnp.int32, (half, ho), 1)
            p_odd = (c == 2 * r + 1).astype(jnp.bfloat16)    # picks rows 1,3,5,...
            p_even = (c == 2 * r).astype(jnp.bfloat16)       # picks rows 0,2,4,...
            dst_ref[pl.ds(1, half), :] = jnp.dot(
                p_odd, y16, preferred_element_type=jnp.float32)
            dst_ref[pl.ds(he_dst, half), :] = jnp.dot(
                p_even, y16, preferred_element_type=jnp.float32)
        else:
            # Tiny tail layer (ho == 4): a 4-row static scatter is cheaper/simpler than
            # a degenerate (2,4)x(4,N) matmul.
            for r_out in range(ho):
                r_pad = r_out + 1
                dst = (r_pad // 2) if (r_pad % 2 == 0) else (he_dst + r_pad // 2)
                dst_ref[pl.ds(dst, 1), :] = y[r_out:r_out + 1, :]

    def kernel(a1_ref,
               wb1_ref, wb2_ref, wb3_ref, wb4_ref,
               aff1_ref, aff2_ref, aff3_ref, aff4_ref,
               wh_ref, bh_ref,
               out_ref,
               s2_ref, s3_ref, s4_ref):
        # Zero VMEM-resident activation buffers (keeps the H-padding rows at 0).
        # Done every grid step: cheap (<20 vreg stores) and safe under megacore split.
        s2_ref[...] = jnp.zeros_like(s2_ref)
        s3_ref[...] = jnp.zeros_like(s3_ref)
        s4_ref[...] = jnp.zeros_like(s4_ref)

        y1 = conv_block(a1_ref, wb1_ref, aff1_ref, HO[0], HE[0])   # (Ho1, 256)
        scatter_parity(y1, s2_ref, HO[0], HE[1])
        y2 = conv_block(s2_ref, wb2_ref, aff2_ref, HO[1], HE[1])   # (Ho2, 256)
        scatter_parity(y2, s3_ref, HO[1], HE[2])
        y3 = conv_block(s3_ref, wb3_ref, aff3_ref, HO[2], HE[2])   # (Ho3, 256)
        scatter_parity(y3, s4_ref, HO[2], HE[3])
        y4 = conv_block(s4_ref, wb4_ref, aff4_ref, HO[3], HE[3])   # (ds, ds*128)

        # Linear head (weight pre-permuted to (h, w, c) order) + Sigmoid, fused.
        z = jnp.sum(y4 * wh_ref[...]) + bh_ref[0, 0]
        out_ref[...] = jnp.reshape(1.0 / (1.0 + jnp.exp(-z)), (1, 1))

    return kernel


# ------------------------------ forward builder ------------------------------

def build_forward(channels, img_size):
    dims = _layer_dims(channels, img_size)
    ds = img_size // 16
    kernel = _make_kernel(dims)
    hp1, wi1, cin1 = dims[0]["hp"], dims[0]["wi"], dims[0]["cin"]

    def forward(x_nchw, pp):
        n = x_nchw.shape[0]

        # --- cheap XLA-side input plumbing (~1x input bytes) ---
        x = jnp.transpose(x_nchw, (0, 2, 3, 1)).astype(jnp.float32)   # NHWC
        x = jnp.pad(x, ((0, 0), (1, 1), (0, 0), (0, 0)))              # pad H only
        x = x.reshape(n, hp1, wi1 * cin1)                             # row-flatten (w,c)
        a1 = jnp.concatenate([x[:, 0::2, :], x[:, 1::2, :]], axis=1)  # parity rows

        def const(shape):
            return pl.BlockSpec(shape, lambda b, _s=shape: (0,) * len(_s))

        in_specs = [pl.BlockSpec((None, hp1, wi1 * cin1), lambda b: (b, 0, 0))]
        in_specs += [const(pp[f"wb{i + 1}"].shape) for i in range(4)]
        in_specs += [const(pp[f"aff{i + 1}"].shape) for i in range(4)]
        in_specs += [const(pp["w_head"].shape), const(pp["b_head"].shape)]

        scratch = [pltpu.VMEM((dims[i]["hp"], dims[i]["wi"] * dims[i]["cin"]),
                              jnp.float32) for i in (1, 2, 3)]

        flops = 2 * n * sum(3 * d["ho"] * d["k"] * d["n"] for d in dims) \
            + 2 * n * ds * ds * 128
        bytes_acc = int(a1.size * 4
                        + sum(pp[f"wb{i + 1}"].size * 2 for i in range(4))
                        + sum(pp[f"aff{i + 1}"].size * 4 for i in range(4))
                        + pp["w_head"].size * 4 + pp["b_head"].size * 4 + n * 4)

        out = pl.pallas_call(
            kernel,
            out_shape=jax.ShapeDtypeStruct((n, 1, 1), jnp.float32),
            grid=(n,),
            in_specs=in_specs,
            out_specs=pl.BlockSpec((None, 1, 1), lambda b: (b, 0, 0)),
            scratch_shapes=scratch,
            compiler_params=pltpu.CompilerParams(
                dimension_semantics=("parallel",)),
            cost_estimate=pl.CostEstimate(flops=int(flops), transcendentals=n,
                                          bytes_accessed=bytes_acc),
        )(a1, pp["wb1"], pp["wb2"], pp["wb3"], pp["wb4"],
          pp["aff1"], pp["aff2"], pp["aff3"], pp["aff4"],
          pp["w_head"], pp["b_head"])
        return out.reshape(n, 1)

    return jax.jit(forward)


# ----------------------------- parameter handling ----------------------------

def init_torch_params(key, channels, img_size):
    """Parameters with the same shapes/layouts as the PyTorch Discriminator."""
    chs = [channels, 16, 32, 64, 128]
    ds = img_size // 16
    keys = jax.random.split(key, 20)
    ki, params = 0, {}
    for i in range(4):
        cin, cout = chs[i], chs[i + 1]
        w = jax.random.normal(keys[ki], (cout, cin, 3, 3), jnp.float32) / np.sqrt(cin * 9)
        ki += 1
        b = 0.05 * jax.random.normal(keys[ki], (cout,), jnp.float32)
        ki += 1
        p = {"w": w, "b": b}
        if i > 0:  # bn=True for blocks 2..4
            p["gamma"] = 1.0 + 0.1 * jax.random.normal(keys[ki], (cout,), jnp.float32)
            ki += 1
            p["beta"] = 0.1 * jax.random.normal(keys[ki], (cout,), jnp.float32)
            ki += 1
            p["mean"] = jnp.zeros((cout,), jnp.float32)   # running stats (eval)
            p["var"] = jnp.ones((cout,), jnp.float32)
        params[f"b{i + 1}"] = p
    d_in = 128 * ds * ds
    params["lin_w"] = jax.random.normal(keys[ki], (1, d_in), jnp.float32) / np.sqrt(d_in)
    params["lin_b"] = jnp.zeros((1,), jnp.float32)
    return params


def prepare_params(params, channels, img_size):
    """One-time packing of PyTorch-layout params into the kernel's layouts."""
    dims = _layer_dims(channels, img_size)
    ds = img_size // 16
    packed = {}
    for i, d in enumerate(dims):
        p = params[f"b{i + 1}"]
        cin, cout, wi, wo = d["cin"], d["cout"], d["wi"], d["wo"]
        w = np.asarray(p["w"], np.float32)                    # (Cout, Cin, 3, 3)
        wk = np.transpose(w, (2, 3, 1, 0))                    # (di, dj, Cin, Cout)
        # Block-sparse per-kernel-row matrices with stride-2 / pad=1 along W baked in.
        wb = np.zeros((3, wi, cin, wo, cout), np.float32)
        for o in range(wo):
            for dj in range(3):
                col = 2 * o - 1 + dj
                if 0 <= col < wi:
                    wb[:, col, :, o, :] = wk[:, dj, :, :]
        packed[f"wb{i + 1}"] = jnp.asarray(
            wb.reshape(3, wi * cin, wo * cout), jnp.bfloat16)

        bias = np.asarray(p["b"], np.float32)
        if "gamma" in p:  # fold eval-mode BatchNorm (applied AFTER LeakyReLU)
            scale = np.asarray(p["gamma"], np.float32) / np.sqrt(
                np.asarray(p["var"], np.float32) + BN_EPS)
            shift = np.asarray(p["beta"], np.float32) - np.asarray(
                p["mean"], np.float32) * scale
        else:
            scale = np.ones((cout,), np.float32)
            shift = np.zeros((cout,), np.float32)
        aff = np.stack([np.tile(bias, wo), np.tile(scale, wo), np.tile(shift, wo)])
        packed[f"aff{i + 1}"] = jnp.asarray(aff, jnp.float32)  # (3, Wo*Cout)

    # Linear head weight permuted from PyTorch's (c, h, w) flatten to (h, w, c).
    lin_w = np.asarray(params["lin_w"], np.float32).reshape(128, ds, ds)
    packed["w_head"] = jnp.asarray(
        np.transpose(lin_w, (1, 2, 0)).reshape(ds, ds * 128), jnp.float32)
    packed["b_head"] = jnp.asarray(
        np.asarray(params["lin_b"], np.float32).reshape(1, 1))
    return packed


# ------------------------- pure-JAX reference (eval) -------------------------

def reference_forward(params, x):
    h = x.astype(jnp.float32)
    for i in range(4):
        p = params[f"b{i + 1}"]
        h = jax.lax.conv_general_dilated(
            h, p["w"], window_strides=(2, 2), padding=((1, 1), (1, 1)),
            dimension_numbers=("NCHW", "OIHW", "NCHW"))
        h = h + p["b"].reshape(1, -1, 1, 1)
        h = jnp.where(h > 0, h, LEAK * h)                 # LeakyReLU(0.2)
        if "gamma" in p:                                  # eval BatchNorm(eps=0.8)
            scale = p["gamma"] / jnp.sqrt(p["var"] + BN_EPS)
            shift = p["beta"] - p["mean"] * scale
            h = h * scale.reshape(1, -1, 1, 1) + shift.reshape(1, -1, 1, 1)
    flat = h.reshape(h.shape[0], -1)
    z = flat @ params["lin_w"].T + params["lin_b"]
    return jax.nn.sigmoid(z)


# ------------------------------------ main -----------------------------------

if __name__ == "__main__":
    channels, img_size, batch = 3, 32, 2      # ds_size = 32 // 2**4 = 2
    key = jax.random.PRNGKey(0)
    pkey, xkey = jax.random.split(key)

    torch_like = init_torch_params(pkey, channels, img_size)
    packed = prepare_params(torch_like, channels, img_size)   # one-time packing
    x = jax.random.normal(xkey, (batch, channels, img_size, img_size), jnp.float32)

    # TODO(synk): training-mode Dropout2d(0.25) / batch-stat BatchNorm not implemented
    # (forward matches eval/inference semantics of the PyTorch module).
    forward = build_forward(channels, img_size)
    validity = jax.block_until_ready(forward(x, packed))
    assert validity.shape == (batch, 1)
    assert bool(jnp.all((validity >= 0.0) & (validity <= 1.0)))

    ref = reference_forward(torch_like, x)
    max_err = float(jnp.max(jnp.abs(validity - ref)))
    assert max_err < 5e-2, f"mismatch vs reference: {max_err}"
    print("KERNEL_OK")
</pallas_src>

<mosaic_0001>
module attributes {stable_mosaic.version = 11 : i64} {
  func.func @kernel(%arg0: i32, %arg1: memref<1x34x96xf32, #tpu.memory_space<vmem>>, %arg2: memref<3x96x256xbf16, #tpu.memory_space<vmem>>, %arg3: memref<3x256x256xbf16, #tpu.memory_space<vmem>>, %arg4: memref<3x256x256xbf16, #tpu.memory_space<vmem>>, %arg5: memref<3x256x256xbf16, #tpu.memory_space<vmem>>, %arg6: memref<3x256xf32, #tpu.memory_space<vmem>>, %arg7: memref<3x256xf32, #tpu.memory_space<vmem>>, %arg8: memref<3x256xf32, #tpu.memory_space<vmem>>, %arg9: memref<3x256xf32, #tpu.memory_space<vmem>>, %arg10: memref<2x256xf32, #tpu.memory_space<vmem>>, %arg11: memref<1x1xf32, #tpu.memory_space<vmem>>, %arg12: memref<1x1x1xf32, #tpu.memory_space<vmem>>, %arg13: memref<18x256xf32, #tpu.memory_space<vmem>>, %arg14: memref<10x256xf32, #tpu.memory_space<vmem>>, %arg15: memref<6x256xf32, #tpu.memory_space<vmem>>) attributes {dimension_semantics = [#tpu.dimension_semantics<parallel>], iteration_bounds = array<i64: 2>, scalar_prefetch = 0 : i64, scratch_operands = 3 : i64, tpu.core_type = #tpu.core_type<tc>, window_params = [{transform_indices = @transform_0, window_bounds = array<i64: 1, 34, 96>}, {pipeline_mode = #tpu.pipeline_mode<synchronous>, transform_indices = @transform_1, window_bounds = array<i64: 3, 96, 256>}, {pipeline_mode = #tpu.pipeline_mode<synchronous>, transform_indices = @transform_2, window_bounds = array<i64: 3, 256, 256>}, {pipeline_mode = #tpu.pipeline_mode<synchronous>, transform_indices = @transform_3, window_bounds = array<i64: 3, 256, 256>}, {pipeline_mode = #tpu.pipeline_mode<synchronous>, transform_indices = @transform_4, window_bounds = array<i64: 3, 256, 256>}, {pipeline_mode = #tpu.pipeline_mode<synchronous>, transform_indices = @transform_5, window_bounds = array<i64: 3, 256>}, {pipeline_mode = #tpu.pipeline_mode<synchronous>, transform_indices = @transform_6, window_bounds = array<i64: 3, 256>}, {pipeline_mode = #tpu.pipeline_mode<synchronous>, transform_indices = @transform_7, window_bounds = array<i64: 3, 256>}, {pipeline_mode = #tpu.pipeline_mode<synchronous>, transform_indices = @transform_8, window_bounds = array<i64: 3, 256>}, {pipeline_mode = #tpu.pipeline_mode<synchronous>, transform_indices = @transform_9, window_bounds = array<i64: 2, 256>}, {pipeline_mode = #tpu.pipeline_mode<synchronous>, transform_indices = @transform_10, window_bounds = array<i64: 1, 1>}, {transform_indices = @transform_11, window_bounds = array<i64: 1, 1, 1>}]} {
    %cst = arith.constant 0.000000e+00 : f32
    %0 = vector.broadcast %cst : f32 to vector<18x256xf32>
    %c0 = arith.constant 0 : index
    %c0_0 = arith.constant 0 : index
    %1 = vector.load %arg13[%c0, %c0_0] : memref<18x256xf32, #tpu.memory_space<vmem>>, vector<18x256xf32>
    tpu.vector_store %arg13[%c0, %c0_0], %0 {strides = array<i32>} : memref<18x256xf32, #tpu.memory_space<vmem>>, vector<18x256xf32>,
    %cst_1 = arith.constant 0.000000e+00 : f32
    %2 = vector.broadcast %cst_1 : f32 to vector<10x256xf32>
    %c0_2 = arith.constant 0 : index
    %c0_3 = arith.constant 0 : index
    %3 = vector.load %arg14[%c0_2, %c0_3] : memref<10x256xf32, #tpu.memory_space<vmem>>, vector<10x256xf32>
    tpu.vector_store %arg14[%c0_2, %c0_3], %2 {strides = array<i32>} : memref<10x256xf32, #tpu.memory_space<vmem>>, vector<10x256xf32>,
    %cst_4 = arith.constant 0.000000e+00 : f32
    %4 = vector.broadcast %cst_4 : f32 to vector<6x256xf32>
    %c0_5 = arith.constant 0 : index
    %c0_6 = arith.constant 0 : index
    %5 = vector.load %arg15[%c0_5, %c0_6] : memref<6x256xf32, #tpu.memory_space<vmem>>, vector<6x256xf32>
    tpu.vector_store %arg15[%c0_5, %c0_6], %4 {strides = array<i32>} : memref<6x256xf32, #tpu.memory_space<vmem>>, vector<6x256xf32>,
    %c0_7 = arith.constant 0 : index
    %c0_8 = arith.constant 0 : index
    %c0_9 = arith.constant 0 : index
    %6 = vector.load %arg1[%c0_7, %c0_8, %c0_9] : memref<1x34x96xf32, #tpu.memory_space<vmem>>, vector<1x16x96xf32>
    %7 = vector.shape_cast %6 : vector<1x16x96xf32> to vector<16x96xf32>
    %8 = arith.truncf %7 : vector<16x96xf32> to vector<16x96xbf16>
    %c0_10 = arith.constant 0 : index
    %c17 = arith.constant 17 : index
    %c0_11 = arith.constant 0 : index
    %9 = vector.load %arg1[%c0_10, %c17, %c0_11] : memref<1x34x96xf32, #tpu.memory_space<vmem>>, vector<1x16x96xf32>
    %10 = vector.shape_cast %9 : vector<1x16x96xf32> to vector<16x96xf32>
    %11 = arith.truncf %10 : vector<16x96xf32> to vector<16x96xbf16>
    %c0_12 = arith.constant 0 : index
    %c1 = arith.constant 1 : index
    %c0_13 = arith.constant 0 : index
    %12 = vector.load %arg1[%c0_12, %c1, %c0_13] : memref<1x34x96xf32, #tpu.memory_space<vmem>>, vector<1x16x96xf32>
    %13 = vector.shape_cast %12 : vector<1x16x96xf32> to vector<16x96xf32>
    %14 = arith.truncf %13 : vector<16x96xf32> to vector<16x96xbf16>
    %c0_14 = arith.constant 0 : index
    %c0_15 = arith.constant 0 : index
    %c0_16 = arith.constant 0 : index
    %15 = vector.load %arg2[%c0_14, %c0_15, %c0_16] : memref<3x96x256xbf16, #tpu.memory_space<vmem>>, vector<1x96x256xbf16>
    %16 = vector.shape_cast %15 : vector<1x96x256xbf16> to vector<96x256xbf16>
    %cst_17 = arith.constant dense<0.000000e+00> : vector<16x256xf32>
    %17 = tpu.matmul %8, %16, %cst_17 {dimension_numbers = #tpu.dot_dimension_numbers<[1], [0], [0], [1], [0, 0, 1, 1], [], []>} : vector<16x96xbf16>, vector<96x256xbf16>, vector<16x256xf32> -> vector<16x256xf32>
    %c1_18 = arith.constant 1 : index
    %c0_19 = arith.constant 0 : index
    %c0_20 = arith.constant 0 : index
    %18 = vector.load %arg2[%c1_18, %c0_19, %c0_20] : memref<3x96x256xbf16, #tpu.memory_space<vmem>>, vector<1x96x256xbf16>
    %19 = vector.shape_cast %18 : vector<1x96x256xbf16> to vector<96x256xbf16>
    %cst_21 = arith.constant dense<0.000000e+00> : vector<16x256xf32>
    %20 = tpu.matmul %11, %19, %cst_21 {dimension_numbers = #tpu.dot_dimension_numbers<[1], [0], [0], [1], [0, 0, 1, 1], [], []>} : vector<16x96xbf16>, vector<96x256xbf16>, vector<16x256xf32> -> vector<16x256xf32>
    %21 = arith.addf %17, %20 : vector<16x256xf32>
    %c2 = arith.constant 2 : index
    %c0_22 = arith.constant 0 : index
    %c0_23 = arith.constant 0 : index
    %22 = vector.load %arg2[%c2, %c0_22, %c0_23] : memref<3x96x256xbf16, #tpu.memory_space<vmem>>, vector<1x96x256xbf16>
    %23 = vector.shape_cast %22 : vector<1x96x256xbf16> to vector<96x256xbf16>
    %cst_24 = arith.constant dense<0.000000e+00> : vector<16x256xf32>
    %24 = tpu.matmul %14, %23, %cst_24 {dimension_numbers = #tpu.dot_dimension_numbers<[1], [0], [0], [1], [0, 0, 1, 1], [], []>} : vector<16x96xbf16>, vector<96x256xbf16>, vector<16x256xf32> -> vector<16x256xf32>
    %25 = arith.addf %21, %24 : vector<16x256xf32>
    %c0_25 = arith.constant 0 : index
    %c0_26 = arith.constant 0 : index
    %26 = vector.load %arg6[%c0_25, %c0_26] : memref<3x256xf32, #tpu.memory_space<vmem>>, vector<3x256xf32>
    %27 = vector.extract_strided_slice %26 {offsets = [0, 0], sizes = [1, 256], strides = [1, 1]} : vector<3x256xf32> to vector<1x256xf32>
    %28 = vector.broadcast %27 : vector<1x256xf32> to vector<16x256xf32>
    %29 = arith.addf %25, %28 : vector<16x256xf32>
    %cst_27 = arith.constant 2.000000e-01 : f32
    %30 = vector.broadcast %cst_27 : f32 to vector<16x256xf32>
    %31 = arith.mulf %30, %29 : vector<16x256xf32>
    %32 = arith.maximumf %29, %31 : vector<16x256xf32>
    %33 = vector.extract_strided_slice %26 {offsets = [1, 0], sizes = [1, 256], strides = [1, 1]} : vector<3x256xf32> to vector<1x256xf32>
    %34 = vector.broadcast %33 : vector<1x256xf32> to vector<16x256xf32>
    %35 = arith.mulf %32, %34 : vector<16x256xf32>
    %36 = vector.extract_strided_slice %26 {offsets = [2, 0], sizes = [1, 256], strides = [1, 1]} : vector<3x256xf32> to vector<1x256xf32>
    %37 = vector.broadcast %36 : vector<1x256xf32> to vector<16x256xf32>
    %38 = arith.addf %35, %37 : vector<16x256xf32>
    %39 = arith.truncf %38 : vector<16x256xf32> to vector<16x256xbf16>
    %40 = tpu.iota {dimensions = array<i32: 0>} : vector<8x16xi32>
    %41 = tpu.iota {dimensions = array<i32: 1>} : vector<8x16xi32>
    %c2_i32 = arith.constant 2 : i32
    %42 = vector.broadcast %c2_i32 : i32 to vector<8x16xi32>
    %43 = arith.muli %42, %40 : vector<8x16xi32>
    %c1_i32 = arith.constant 1 : i32
    %44 = vector.broadcast %c1_i32 : i32 to vector<8x16xi32>
    %45 = arith.addi %43, %44 : vector<8x16xi32>
    %46 = arith.cmpi eq, %41, %45 : vector<8x16xi32>
    %47 = arith.extui %46 : vector<8x16xi1> to vector<8x16xi32>
    %48 = arith.sitofp %47 : vector<8x16xi32> to vector<8x16xf32>
    %49 = arith.truncf %48 : vector<8x16xf32> to vector<8x16xbf16>
    %c2_i32_28 = arith.constant 2 : i32
    %50 = vector.broadcast %c2_i32_28 : i32 to vector<8x16xi32>
    %51 = arith.muli %50, %40 : vector<8x16xi32>
    %52 = arith.cmpi eq, %41, %51 : vector<8x16xi32>
    %53 = arith.extui %52 : vector<8x16xi1> to vector<8x16xi32>
    %54 = arith.sitofp %53 : vector<8x16xi32> to vector<8x16xf32>
    %55 = arith.truncf %54 : vector<8x16xf32> to vector<8x16xbf16>
    %cst_29 = arith.constant dense<0.000000e+00> : vector<8x256xf32>
    %56 = tpu.matmul %49, %39, %cst_29 {dimension_numbers = #tpu.dot_dimension_numbers<[1], [0], [0], [1], [0, 0, 1, 1], [], []>} : vector<8x16xbf16>, vector<16x256xbf16>, vector<8x256xf32> -> vector<8x256xf32>
    %c1_30 = arith.constant 1 : index
    %c0_31 = arith.constant 0 : index
    %57 = vector.load %arg13[%c1_30, %c0_31] : memref<18x256xf32, #tpu.memory_space<vmem>>, vector<8x256xf32>
    tpu.vector_store %arg13[%c1_30, %c0_31], %56 {strides = array<i32>} : memref<18x256xf32, #tpu.memory_space<vmem>>, vector<8x256xf32>,
    %cst_32 = arith.constant dense<0.000000e+00> : vector<8x256xf32>
    %58 = tpu.matmul %55, %39, %cst_32 {dimension_numbers = #tpu.dot_dimension_numbers<[1], [0], [0], [1], [0, 0, 1, 1], [], []>} : vector<8x16xbf16>, vector<16x256xbf16>, vector<8x256xf32> -> vector<8x256xf32>
    %c9 = arith.constant 9 : index
    %c0_33 = arith.constant 0 : index
    %59 = vector.load %arg13[%c9, %c0_33] : memref<18x256xf32, #tpu.memory_space<vmem>>, vector<8x256xf32>
    tpu.vector_store %arg13[%c9, %c0_33], %58 {strides = array<i32>} : memref<18x256xf32, #tpu.memory_space<vmem>>, vector<8x256xf32>,
    %c0_34 = arith.constant 0 : index
    %c0_35 = arith.constant 0 : index
    %60 = vector.load %arg13[%c0_34, %c0_35] : memref<18x256xf32, #tpu.memory_space<vmem>>, vector<8x256xf32>
    %61 = arith.truncf %60 : vector<8x256xf32> to vector<8x256xbf16>
    %c9_36 = arith.constant 9 : index
    %c0_37 = arith.constant 0 : index
    %62 = vector.load %arg13[%c9_36, %c0_37] : memref<18x256xf32, #tpu.memory_space<vmem>>, vector<8x256xf32>
    %63 = arith.truncf %62 : vector<8x256xf32> to vector<8x256xbf16>
    %c1_38 = arith.constant 1 : index
    %c0_39 = arith.constant 0 : index
    %64 = vector.load %arg13[%c1_38, %c0_39] : memref<18x256xf32, #tpu.memory_space<vmem>>, vector<8x256xf32>
    %65 = arith.truncf %64 : vector<8x256xf32> to vector<8x256xbf16>
    %c0_40 = arith.constant 0 : index
    %c0_41 = arith.constant 0 : index
    %c0_42 = arith.constant 0 : index
    %66 = vector.load %arg3[%c0_40, %c0_41, %c0_42] : memref<3x256x256xbf16, #tpu.memory_space<vmem>>, vector<1x256x256xbf16>
    %67 = vector.shape_cast %66 : vector<1x256x256xbf16> to vector<256x256xbf16>
    %cst_43 = arith.constant dense<0.000000e+00> : vector<8x256xf32>
    %68 = tpu.matmul %61, %67, %cst_43 {dimension_numbers = #tpu.dot_dimension_numbers<[1], [0], [0], [1], [0, 0, 1, 1], [], []>} : vector<8x256xbf16>, vector<256x256xbf16>, vector<8x256xf32> -> vector<8x256xf32>
    %c1_44 = arith.constant 1 : index
    %c0_45 = arith.constant 0 : index
    %c0_46 = arith.constant 0 : index
    %69 = vector.load %arg3[%c1_44, %c0_45, %c0_46] : memref<3x256x256xbf16, #tpu.memory_space<vmem>>, vector<1x256x256xbf16>
    %70 = vector.shape_cast %69 : vector<1x256x256xbf16> to vector<256x256xbf16>
    %cst_47 = arith.constant dense<0.000000e+00> : vector<8x256xf32>
    %71 = tpu.matmul %63, %70, %cst_47 {dimension_numbers = #tpu.dot_dimension_numbers<[1], [0], [0], [1], [0, 0, 1, 1], [], []>} : vector<8x256xbf16>, vector<256x256xbf16>, vector<8x256xf32> -> vector<8x256xf32>
    %72 = arith.addf %68, %71 : vector<8x256xf32>
    %c2_48 = arith.constant 2 : index
    %c0_49 = arith.constant 0 : index
    %c0_50 = arith.constant 0 : index
    %73 = vector.load %arg3[%c2_48, %c0_49, %c0_50] : memref<3x256x256xbf16, #tpu.memory_space<vmem>>, vector<1x256x256xbf16>
    %74 = vector.shape_cast %73 : vector<1x256x256xbf16> to vector<256x256xbf16>
    %cst_51 = arith.constant dense<0.000000e+00> : vector<8x256xf32>
    %75 = tpu.matmul %65, %74, %cst_51 {dimension_numbers = #tpu.dot_dimension_numbers<[1], [0], [0], [1], [0, 0, 1, 1], [], []>} : vector<8x256xbf16>, vector<256x256xbf16>, vector<8x256xf32> -> vector<8x256xf32>
    %76 = arith.addf %72, %75 : vector<8x256xf32>
    %c0_52 = arith.constant 0 : index
    %c0_53 = arith.constant 0 : index
    %77 = vector.load %arg7[%c0_52, %c0_53] : memref<3x256xf32, #tpu.memory_space<vmem>>, vector<3x256xf32>
    %78 = vector.extract_strided_slice %77 {offsets = [0, 0], sizes = [1, 256], strides = [1, 1]} : vector<3x256xf32> to vector<1x256xf32>
    %79 = vector.broadcast %78 : vector<1x256xf32> to vector<8x256xf32>
    %80 = arith.addf %76, %79 : vector<8x256xf32>
    %cst_54 = arith.constant 2.000000e-01 : f32
    %81 = vector.broadcast %cst_54 : f32 to vector<8x256xf32>
    %82 = arith.mulf %81, %80 : vector<8x256xf32>
    %83 = arith.maximumf %80, %82 : vector<8x256xf32>
    %84 = vector.extract_strided_slice %77 {offsets = [1, 0], sizes = [1, 256], strides = [1, 1]} : vector<3x256xf32> to vector<1x256xf32>
    %85 = vector.broadcast %84 : vector<1x256xf32> to vector<8x256xf32>
    %86 = arith.mulf %83, %85 : vector<8x256xf32>
    %87 = vector.extract_strided_slice %77 {offsets = [2, 0], sizes = [1, 256], strides = [1, 1]} : vector<3x256xf32> to vector<1x256xf32>
    %88 = vector.broadcast %87 : vector<1x256xf32> to vector<8x256xf32>
    %89 = arith.addf %86, %88 : vector<8x256xf32>
    %90 = arith.truncf %89 : vector<8x256xf32> to vector<8x256xbf16>
    %91 = tpu.iota {dimensions = array<i32: 0>} : vector<4x8xi32>
    %92 = tpu.iota {dimensions = array<i32: 1>} : vector<4x8xi32>
    %c2_i32_55 = arith.constant 2 : i32
    %93 = vector.broadcast %c2_i32_55 : i32 to vector<4x8xi32>
    %94 = arith.muli %93, %91 : vector<4x8xi32>
    %c1_i32_56 = arith.constant 1 : i32
    %95 = vector.broadcast %c1_i32_56 : i32 to vector<4x8xi32>
    %96 = arith.addi %94, %95 : vector<4x8xi32>
    %97 = arith.cmpi eq, %92, %96 : vector<4x8xi32>
    %98 = arith.extui %97 : vector<4x8xi1> to vector<4x8xi32>
    %99 = arith.sitofp %98 : vector<4x8xi32> to vector<4x8xf32>
    %100 = arith.truncf %99 : vector<4x8xf32> to vector<4x8xbf16>
    %c2_i32_57 = arith.constant 2 : i32
    %101 = vector.broadcast %c2_i32_57 : i32 to vector<4x8xi32>
    %102 = arith.muli %101, %91 : vector<4x8xi32>
    %103 = arith.cmpi eq, %92, %102 : vector<4x8xi32>
    %104 = arith.extui %103 : vector<4x8xi1> to vector<4x8xi32>
    %105 = arith.sitofp %104 : vector<4x8xi32> to vector<4x8xf32>
    %106 = arith.truncf %105 : vector<4x8xf32> to vector<4x8xbf16>
    %cst_58 = arith.constant dense<0.000000e+00> : vector<4x256xf32>
    %107 = tpu.matmul %100, %90, %cst_58 {dimension_numbers = #tpu.dot_dimension_numbers<[1], [0], [0], [1], [0, 0, 1, 1], [], []>} : vector<4x8xbf16>, vector<8x256xbf16>, vector<4x256xf32> -> vector<4x256xf32>
    %c1_59 = arith.constant 1 : index
    %c0_60 = arith.constant 0 : index
    %108 = vector.load %arg14[%c1_59, %c0_60] : memref<10x256xf32, #tpu.memory_space<vmem>>, vector<4x256xf32>
    tpu.vector_store %arg14[%c1_59, %c0_60], %107 {strides = array<i32>} : memref<10x256xf32, #tpu.memory_space<vmem>>, vector<4x256xf32>,
    %cst_61 = arith.constant dense<0.000000e+00> : vector<4x256xf32>
    %109 = tpu.matmul %106, %90, %cst_61 {dimension_numbers = #tpu.dot_dimension_numbers<[1], [0], [0], [1], [0, 0, 1, 1], [], []>} : vector<4x8xbf16>, vector<8x256xbf16>, vector<4x256xf32> -> vector<4x256xf32>
    %c5 = arith.constant 5 : index
    %c0_62 = arith.constant 0 : index
    %110 = vector.load %arg14[%c5, %c0_62] : memref<10x256xf32, #tpu.memory_space<vmem>>, vector<4x256xf32>
    tpu.vector_store %arg14[%c5, %c0_62], %109 {strides = array<i32>} : memref<10x256xf32, #tpu.memory_space<vmem>>, vector<4x256xf32>,
    %c0_63 = arith.constant 0 : index
    %c0_64 = arith.constant 0 : index
    %111 = vector.load %arg14[%c0_63, %c0_64] : memref<10x256xf32, #tpu.memory_space<vmem>>, vector<4x256xf32>
    %112 = arith.truncf %111 : vector<4x256xf32> to vector<4x256xbf16>
    %c5_65 = arith.constant 5 : index
    %c0_66 = arith.constant 0 : index
    %113 = vector.load %arg14[%c5_65, %c0_66] : memref<10x256xf32, #tpu.memory_space<vmem>>, vector<4x256xf32>
    %114 = arith.truncf %113 : vector<4x256xf32> to vector<4x256xbf16>
    %c1_67 = arith.constant 1 : index
    %c0_68 = arith.constant 0 : index
    %115 = vector.load %arg14[%c1_67, %c0_68] : memref<10x256xf32, #tpu.memory_space<vmem>>, vector<4x256xf32>
    %116 = arith.truncf %115 : vector<4x256xf32> to vector<4x256xbf16>
    %c0_69 = arith.constant 0 : index
    %c0_70 = arith.constant 0 : index
    %c0_71 = arith.constant 0 : index
    %117 = vector.load %arg4[%c0_69, %c0_70, %c0_71] : memref<3x256x256xbf16, #tpu.memory_space<vmem>>, vector<1x256x256xbf16>
    %118 = vector.shape_cast %117 : vector<1x256x256xbf16> to vector<256x256xbf16>
    %cst_72 = arith.constant dense<0.000000e+00> : vector<4x256xf32>
    %119 = tpu.matmul %112, %118, %cst_72 {dimension_numbers = #tpu.dot_dimension_numbers<[1], [0], [0], [1], [0, 0, 1, 1], [], []>} : vector<4x256xbf16>, vector<256x256xbf16>, vector<4x256xf32> -> vector<4x256xf32>
    %c1_73 = arith.constant 1 : index
    %c0_74 = arith.constant 0 : index
    %c0_75 = arith.constant 0 : index
    %120 = vector.load %arg4[%c1_73, %c0_74, %c0_75] : memref<3x256x256xbf16, #tpu.memory_space<vmem>>, vector<1x256x256xbf16>
    %121 = vector.shape_cast %120 : vector<1x256x256xbf16> to vector<256x256xbf16>
    %cst_76 = arith.constant dense<0.000000e+00> : vector<4x256xf32>
    %122 = tpu.matmul %114, %121, %cst_76 {dimension_numbers = #tpu.dot_dimension_numbers<[1], [0], [0], [1], [0, 0, 1, 1], [], []>} : vector<4x256xbf16>, vector<256x256xbf16>, vector<4x256xf32> -> vector<4x256xf32>
    %123 = arith.addf %119, %122 : vector<4x256xf32>
    %c2_77 = arith.constant 2 : index
    %c0_78 = arith.constant 0 : index
    %c0_79 = arith.constant 0 : index
    %124 = vector.load %arg4[%c2_77, %c0_78, %c0_79] : memref<3x256x256xbf16, #tpu.memory_space<vmem>>, vector<1x256x256xbf16>
    %125 = vector.shape_cast %124 : vector<1x256x256xbf16> to vector<256x256xbf16>
    %cst_80 = arith.constant dense<0.000000e+00> : vector<4x256xf32>
    %126 = tpu.matmul %116, %125, %cst_80 {dimension_numbers = #tpu.dot_dimension_numbers<[1], [0], [0], [1], [0, 0, 1, 1], [], []>} : vector<4x256xbf16>, vector<256x256xbf16>, vector<4x256xf32> -> vector<4x256xf32>
    %127 = arith.addf %123, %126 : vector<4x256xf32>
    %c0_81 = arith.constant 0 : index
    %c0_82 = arith.constant 0 : index
    %128 = vector.load %arg8[%c0_81, %c0_82] : memref<3x256xf32, #tpu.memory_space<vmem>>, vector<3x256xf32>
    %129 = vector.extract_strided_slice %128 {offsets = [0, 0], sizes = [1, 256], strides = [1, 1]} : vector<3x256xf32> to vector<1x256xf32>
    %130 = vector.broadcast %129 : vector<1x256xf32> to vector<4x256xf32>
    %131 = arith.addf %127, %130 : vector<4x256xf32>
    %cst_83 = arith.constant 2.000000e-01 : f32
    %132 = vector.broadcast %cst_83 : f32 to vector<4x256xf32>
    %133 = arith.mulf %132, %131 : vector<4x256xf32>
    %134 = arith.maximumf %131, %133 : vector<4x256xf32>
    %135 = vector.extract_strided_slice %128 {offsets = [1, 0], sizes = [1, 256], strides = [1, 1]} : vector<3x256xf32> to vector<1x256xf32>
    %136 = vector.broadcast %135 : vector<1x256xf32> to vector<4x256xf32>
    %137 = arith.mulf %134, %136 : vector<4x256xf32>
    %138 = vector.extract_strided_slice %128 {offsets = [2, 0], sizes = [1, 256], strides = [1, 1]} : vector<3x256xf32> to vector<1x256xf32>
    %139 = vector.broadcast %138 : vector<1x256xf32> to vector<4x256xf32>
    %140 = arith.addf %137, %139 : vector<4x256xf32>
    %141 = vector.extract_strided_slice %140 {offsets = [0, 0], sizes = [1, 256], strides = [1, 1]} : vector<4x256xf32> to vector<1x256xf32>
    %c3 = arith.constant 3 : index
    %c0_84 = arith.constant 0 : index
    %142 = vector.load %arg15[%c3, %c0_84] : memref<6x256xf32, #tpu.memory_space<vmem>>, vector<1x256xf32>
    tpu.vector_store %arg15[%c3, %c0_84], %141 {strides = array<i32>} : memref<6x256xf32, #tpu.memory_space<vmem>>, vector<1x256xf32>,
    %143 = vector.extract_strided_slice %140 {offsets = [1, 0], sizes = [1, 256], strides = [1, 1]} : vector<4x256xf32> to vector<1x256xf32>
    %c1_85 = arith.constant 1 : index
    %c0_86 = arith.constant 0 : index
    %144 = vector.load %arg15[%c1_85, %c0_86] : memref<6x256xf32, #tpu.memory_space<vmem>>, vector<1x256xf32>
    tpu.vector_store %arg15[%c1_85, %c0_86], %143 {strides = array<i32>} : memref<6x256xf32, #tpu.memory_space<vmem>>, vector<1x256xf32>,
    %145 = vector.extract_strided_slice %140 {offsets = [2, 0], sizes = [1, 256], strides = [1, 1]} : vector<4x256xf32> to vector<1x256xf32>
    %c4 = arith.constant 4 : index
    %c0_87 = arith.constant 0 : index
    %146 = vector.load %arg15[%c4, %c0_87] : memref<6x256xf32, #tpu.memory_space<vmem>>, vector<1x256xf32>
    tpu.vector_store %arg15[%c4, %c0_87], %145 {strides = array<i32>} : memref<6x256xf32, #tpu.memory_space<vmem>>, vector<1x256xf32>,
    %147 = vector.extract_strided_slice %140 {offsets = [3, 0], sizes = [1, 256], strides = [1, 1]} : vector<4x256xf32> to vector<1x256xf32>
    %c2_88 = arith.constant 2 : index
    %c0_89 = arith.constant 0 : index
    %148 = vector.load %arg15[%c2_88, %c0_89] : memref<6x256xf32, #tpu.memory_space<vmem>>, vector<1x256xf32>
    tpu.vector_store %arg15[%c2_88, %c0_89], %147 {strides = array<i32>} : memref<6x256xf32, #tpu.memory_space<vmem>>, vector<1x256xf32>,
    %c0_90 = arith.constant 0 : index
    %c0_91 = arith.constant 0 : index
    %149 = vector.load %arg15[%c0_90, %c0_91] : memref<6x256xf32, #tpu.memory_space<vmem>>, vector<2x256xf32>
    %150 = arith.truncf %149 : vector<2x256xf32> to vector<2x256xbf16>
    %c3_92 = arith.constant 3 : index
    %c0_93 = arith.constant 0 : index
    %151 = vector.load %arg15[%c3_92, %c0_93] : memref<6x256xf32, #tpu.memory_space<vmem>>, vector<2x256xf32>
    %152 = arith.truncf %151 : vector<2x256xf32> to vector<2x256xbf16>
    %c1_94 = arith.constant 1 : index
    %c0_95 = arith.constant 0 : index
    %153 = vector.load %arg15[%c1_94, %c0_95] : memref<6x256xf32, #tpu.memory_space<vmem>>, vector<2x256xf32>
    %154 = arith.truncf %153 : vector<2x256xf32> to vector<2x256xbf16>
    %c0_96 = arith.constant 0 : index
    %c0_97 = arith.constant 0 : index
    %c0_98 = arith.constant 0 : index
    %155 = vector.load %arg5[%c0_96, %c0_97, %c0_98] : memref<3x256x256xbf16, #tpu.memory_space<vmem>>, vector<1x256x256xbf16>
    %156 = vector.shape_cast %155 : vector<1x256x256xbf16> to vector<256x256xbf16>
    %cst_99 = arith.constant dense<0.000000e+00> : vector<2x256xf32>
    %157 = tpu.matmul %150, %156, %cst_99 {dimension_numbers = #tpu.dot_dimension_numbers<[1], [0], [0], [1], [0, 0, 1, 1], [], []>} : vector<2x256xbf16>, vector<256x256xbf16>, vector<2x256xf32> -> vector<2x256xf32>
    %c1_100 = arith.constant 1 : index
    %c0_101 = arith.constant 0 : index
    %c0_102 = arith.constant 0 : index
    %158 = vector.load %arg5[%c1_100, %c0_101, %c0_102] : memref<3x256x256xbf16, #tpu.memory_space<vmem>>, vector<1x256x256xbf16>
    %159 = vector.shape_cast %158 : vector<1x256x256xbf16> to vector<256x256xbf16>
    %cst_103 = arith.constant dense<0.000000e+00> : vector<2x256xf32>
    %160 = tpu.matmul %152, %159, %cst_103 {dimension_numbers = #tpu.dot_dimension_numbers<[1], [0], [0], [1], [0, 0, 1, 1], [], []>} : vector<2x256xbf16>, vector<256x256xbf16>, vector<2x256xf32> -> vector<2x256xf32>
    %161 = arith.addf %157, %160 : vector<2x256xf32>
    %c2_104 = arith.constant 2 : index
    %c0_105 = arith.constant 0 : index
    %c0_106 = arith.constant 0 : index
    %162 = vector.load %arg5[%c2_104, %c0_105, %c0_106] : memref<3x256x256xbf16, #tpu.memory_space<vmem>>, vector<1x256x256xbf16>
    %163 = vector.shape_cast %162 : vector<1x256x256xbf16> to vector<256x256xbf16>
    %cst_107 = arith.constant dense<0.000000e+00> : vector<2x256xf32>
    %164 = tpu.matmul %154, %163, %cst_107 {dimension_numbers = #tpu.dot_dimension_numbers<[1], [0], [0], [1], [0, 0, 1, 1], [], []>} : vector<2x256xbf16>, vector<256x256xbf16>, vector<2x256xf32> -> vector<2x256xf32>
    %165 = arith.addf %161, %164 : vector<2x256xf32>
    %c0_108 = arith.constant 0 : index
    %c0_109 = arith.constant 0 : index
    %166 = vector.load %arg9[%c0_108, %c0_109] : memref<3x256xf32, #tpu.memory_space<vmem>>, vector<3x256xf32>
    %167 = vector.extract_strided_slice %166 {offsets = [0, 0], sizes = [1, 256], strides = [1, 1]} : vector<3x256xf32> to vector<1x256xf32>
    %168 = vector.broadcast %167 : vector<1x256xf32> to vector<2x256xf32>
    %169 = arith.addf %165, %168 : vector<2x256xf32>
    %cst_110 = arith.constant 2.000000e-01 : f32
    %170 = vector.broadcast %cst_110 : f32 to vector<2x256xf32>
    %171 = arith.mulf %170, %169 : vector<2x256xf32>
    %172 = arith.maximumf %169, %171 : vector<2x256xf32>
    %173 = vector.extract_strided_slice %166 {offsets = [1, 0], sizes = [1, 256], strides = [1, 1]} : vector<3x256xf32> to vector<1x256xf32>
    %174 = vector.broadcast %173 : vector<1x256xf32> to vector<2x256xf32>
    %175 = arith.mulf %172, %174 : vector<2x256xf32>
    %176 = vector.extract_strided_slice %166 {offsets = [2, 0], sizes = [1, 256], strides = [1, 1]} : vector<3x256xf32> to vector<1x256xf32>
    %177 = vector.broadcast %176 : vector<1x256xf32> to vector<2x256xf32>
    %178 = arith.addf %175, %177 : vector<2x256xf32>
    %c0_111 = arith.constant 0 : index
    %c0_112 = arith.constant 0 : index
    %179 = vector.load %arg10[%c0_111, %c0_112] : memref<2x256xf32, #tpu.memory_space<vmem>>, vector<2x256xf32>
    %180 = arith.mulf %178, %179 : vector<2x256xf32>
    %181 = vector.shape_cast %180 : vector<2x256xf32> to vector<1x2x256xf32>
    %cst_113 = arith.constant dense<0.000000e+00> : vector<1xf32>
    %182 = vector.multi_reduction <add>, %181, %cst_113 [1, 2] : vector<1x2x256xf32> to vector<1xf32>
    %183 = vector.shape_cast %182 : vector<1xf32> to vector<1x1x1xf32>
    %184 = vector.extract %183[0, 0, 0] : f32 from vector<1x1x1xf32>
    %c0_114 = arith.constant 0 : index
    %c0_115 = arith.constant 0 : index
    %185 = vector.load %arg11[%c0_114, %c0_115] : memref<1x1xf32, #tpu.memory_space<vmem>>, vector<1x1xf32>
    %186 = vector.extract %185[0, 0] : f32 from vector<1x1xf32>
    %187 = arith.addf %184, %186 : f32
    %cst_116 = arith.constant 0.000000e+00 : f32
    %188 = arith.subf %cst_116, %187 : f32
    %189 = math.exp %188 : f32
    %cst_117 = arith.constant 1.000000e+00 : f32
    %190 = arith.addf %cst_117, %189 : f32
    %cst_118 = arith.constant 1.000000e+00 : f32
    %191 = arith.divf %cst_118, %190 : f32
    %192 = vector.broadcast %191 : f32 to vector<1x1xf32>
    %c0_119 = arith.constant 0 : index
    %c0_120 = arith.constant 0 : index
    %c0_121 = arith.constant 0 : index
    %193 = vector.load %arg12[%c0_119, %c0_120, %c0_121] : memref<1x1x1xf32, #tpu.memory_space<vmem>>, vector<1x1x1xf32>
    %194 = vector.shape_cast %193 : vector<1x1x1xf32> to vector<1x1xf32>
    %195 = vector.shape_cast %192 : vector<1x1xf32> to vector<1x1x1xf32>
    tpu.vector_store %arg12[%c0_119, %c0_120, %c0_121], %195 {strides = array<i32>} : memref<1x1x1xf32, #tpu.memory_space<vmem>>, vector<1x1x1xf32>,
    return
  }
  func.func @transform_0(%arg0: i32) -> (i32, i32, i32) {
    %c0_i32 = arith.constant 0 : i32
    %c0_i32_0 = arith.constant 0 : i32
    %c0_i32_1 = arith.constant 0 : i32
    return %arg0, %c0_i32, %c0_i32_0 : i32, i32, i32
  }
  func.func @transform_1(%arg0: i32) -> (i32, i32, i32) {
    %c0_i32 = arith.constant 0 : i32
    %c0_i32_0 = arith.constant 0 : i32
    %c0_i32_1 = arith.constant 0 : i32
    %c0_i32_2 = arith.constant 0 : i32
    return %c0_i32, %c0_i32_0, %c0_i32_1 : i32, i32, i32
  }
  func.func @transform_2(%arg0: i32) -> (i32, i32, i32) {
    %c0_i32 = arith.constant 0 : i32
    %c0_i32_0 = arith.constant 0 : i32
    %c0_i32_1 = arith.constant 0 : i32
    %c0_i32_2 = arith.constant 0 : i32
    return %c0_i32, %c0_i32_0, %c0_i32_1 : i32, i32, i32
  }
  func.func @transform_3(%arg0: i32) -> (i32, i32, i32) {
    %c0_i32 = arith.constant 0 : i32
    %c0_i32_0 = arith.constant 0 : i32
    %c0_i32_1 = arith.constant 0 : i32
    %c0_i32_2 = arith.constant 0 : i32
    return %c0_i32, %c0_i32_0, %c0_i32_1 : i32, i32, i32
  }
  func.func @transform_4(%arg0: i32) -> (i32, i32, i32) {
    %c0_i32 = arith.constant 0 : i32
    %c0_i32_0 = arith.constant 0 : i32
    %c0_i32_1 = arith.constant 0 : i32
    %c0_i32_2 = arith.constant 0 : i32
    return %c0_i32, %c0_i32_0, %c0_i32_1 : i32, i32, i32
  }
  func.func @transform_5(%arg0: i32) -> (i32, i32) {
    %c0_i32 = arith.constant 0 : i32
    %c0_i32_0 = arith.constant 0 : i32
    %c0_i32_1 = arith.constant 0 : i32
    return %c0_i32, %c0_i32_0 : i32, i32
  }
  func.func @transform_6(%arg0: i32) -> (i32, i32) {
    %c0_i32 = arith.constant 0 : i32
    %c0_i32_0 = arith.constant 0 : i32
    %c0_i32_1 = arith.constant 0 : i32
    return %c0_i32, %c0_i32_0 : i32, i32
  }
  func.func @transform_7(%arg0: i32) -> (i32, i32) {
    %c0_i32 = arith.constant 0 : i32
    %c0_i32_0 = arith.constant 0 : i32
    %c0_i32_1 = arith.constant 0 : i32
    return %c0_i32, %c0_i32_0 : i32, i32
  }
  func.func @transform_8(%arg0: i32) -> (i32, i32) {
    %c0_i32 = arith.constant 0 : i32
    %c0_i32_0 = arith.constant 0 : i32
    %c0_i32_1 = arith.constant 0 : i32
    return %c0_i32, %c0_i32_0 : i32, i32
  }
  func.func @transform_9(%arg0: i32) -> (i32, i32) {
    %c0_i32 = arith.constant 0 : i32
    %c0_i32_0 = arith.constant 0 : i32
    %c0_i32_1 = arith.constant 0 : i32
    return %c0_i32, %c0_i32_0 : i32, i32
  }
  func.func @transform_10(%arg0: i32) -> (i32, i32) {
    %c0_i32 = arith.constant 0 : i32
    %c0_i32_0 = arith.constant 0 : i32
    %c0_i32_1 = arith.constant 0 : i32
    return %c0_i32, %c0_i32_0 : i32, i32
  }
  func.func @transform_11(%arg0: i32) -> (i32, i32, i32) {
    %c0_i32 = arith.constant 0 : i32
    %c0_i32_0 = arith.constant 0 : i32
    %c0_i32_1 = arith.constant 0 : i32
    return %arg0, %c0_i32, %c0_i32_0 : i32, i32, i32
  }
}

</mosaic_0001>

<bundles_post_ra>
// kernel: forward.1
= control target key start
LH: loop header
LB: loop body
LE: loop exit
PB: predicated region body
PF: predicated region fallthrough
CT: control target
= control target key end

     0   :  { %s5678_s0 = inlined_call_operand.vmem [shape: f32[2,34,96], index: 0, kind: input, shape index: {}]   ;;  %s5679_s1 = inlined_call_operand.vmem [shape: bf16[3,96,256], index: 1, kind: input, shape index: {}]   ;;  %s5680_s2 = inlined_call_operand.vmem [shape: bf16[3,256,256], index: 2, kind: input, shape index: {}]   ;;  %s5681_s3 = inlined_call_operand.vmem [shape: bf16[3,256,256], index: 3, kind: input, shape index: {}]   ;;  %s5682_s4 = inlined_call_operand.hbm [shape: bf16[3,256,256], index: 4, kind: input, shape index: {}]   ;;  %s5683_s5 = inlined_call_operand.vmem [shape: f32[3,256], index: 5, kind: input, shape index: {}]   ;;  %s5684_s6 = inlined_call_operand.vmem [shape: f32[3,256], index: 6, kind: input, shape index: {}]   ;;  %s5685_s7 = inlined_call_operand.vmem [shape: f32[3,256], index: 7, kind: input, shape index: {}]   ;;  %s5686_s8 = inlined_call_operand.vmem [shape: f32[3,256], index: 8, kind: input, shape index: {}]   ;;  %s5687_s9 = inlined_call_operand.vmem [shape: f32[2,256], index: 9, kind: input, shape index: {}]   ;;  %s5688_s10 = inlined_call_operand.<no memory space> [shape: f32[1,1], index: 10, kind: input, shape index: {}]   ;;  %s5689_s11 = inlined_call_operand.vmem [shape: f32[2,1,1], index: 11, kind: output, shape index: {}]  }
   0x1   :  { %v16_v0 = vstv %s5688_s10 }
   0x2   :  { %17 = vst [vmem:[#allocation5] sm:$0x1] %v16_v0 }
   0x3   :  { %18 = vsyncpa [#allocation7], 0  ;;  %s4823_s19 = smov 0  }
   0x4 LB: > { %s4829_s20 = sadd.s32 4294967295, %s4752_s19   ;;  %p3697_p0 = scmp.ge.s32.totalorder %s4752_s19, 1  ;;  %s4752_s19 = sphi %s4823_s19, %s24_s19  }
   0x5   : > { %p291_p1 = scmp.lt.s32.totalorder %s4752_s19, 3  ;;  %s4754_s21 = smov [#allocation6]  }
   0x6   : > { %s312_s10 = sshll.u32 %s4754_s21, 4  ;;  %p4210_p3 = scmp.eq.s32.totalorder %s4829_s20, 0  ;;  %s313_s10 = int_to_ptr.vmem [resolvable:$true] %s312_s10 }
   0x7   : > { %p4833_p2 = pnand %p3697_p0, %p291_p1  ;;  %s4727_s23 = scalar_lea.vmem %s313_s10, 12288 }
   0x8   : > { %p4728_p7 = scmp.ne.s32.totalorder %s313_s10, %s4727_s23  ;;  %p4735_p10 = scmp.lt.s32.totalorder %s313_s10, %s313_s10 }
   0x9   : > { %p4206_p4 = pneg %p4833_p2  ;;  %p4736_p11 = scmp.lt.s32.totalorder %s4727_s23, %s4727_s23 }
   0xb   : > { %p4207_p5 = pnand %p4210_p3, %p4206_p4  ;;  %p4737_p12 = por %p4736_p11, %p4735_p10 }
   0xd   : > { %p4718_p6 = pneg %p4207_p5 }
   0xf   : > { %p4730_p8 = pnand %p4728_p7, %p4718_p6 }
  0x11   : > { %p4731_p9 = pneg %p4730_p8 }
  0x13   : > { %p4738_p13 = pnand %p4737_p12, %p4731_p9 }
  0x15   : > { %4741 = shalt.err (!%p4738_p13)
}
  0x16   : > { %s4755_s24 = smov 128   ;;  %s4756_s25 = smov 8  }
  0x17   : > { %4209 = dma.hbm_to_vmem [thread:$0]  (!%p4207_p5), %s5682_s4, 12288, %s313_s10, [#allocation7], %s4755_s24, %s4755_s24, %s4756_s25  }
  0x18   : > { %354 = sbr.rel (%p4833_p2) target bundleno = 1947 (0x79b), region = 64 }
  0x1d   : > { %4747 = dma.done.wait (%p4210_p3), [#allocation7], 12288  }
  0x1e   : > { %4749 = vsyncadd (%p4210_p3), [#allocation7], 4294955008  ;;  %v4757_v1 = vmov 0   ;;  %v4226_v2 = vld [vmem:[%s5679_s1 + $0xb4] ss:$8 sps:$4 sm:$0xff]   ;;  %p392_p0 = scmp.lt.s32.totalorder %s4829_s20, 1 }
  0x1f   : > { %543 = vmatprep.mubr.bf16.mxu0 %v4757_v1  ;;  %911 = vmatprep.mubr.bf16.mxu1 %v4757_v1  ;;  %v4228_v3 = vld [vmem:[%s5679_s1 + $0xb0] ss:$8 sps:$4 sm:$0xff]   ;;  %v4229_v4 = vld [vmem:[%s5679_s1 + $0xa4] ss:$8 sps:$4 sm:$0xff]   ;;  %v4231_v5 = vld [vmem:[%s5679_s1 + $0xa0] ss:$8 sps:$4 sm:$0xff]  }
  0x20   : > { %515 = vmatprep.subr.bf16.mxu0 %v4226_v2  ;;  %v4232_v6 = vld [vmem:[%s5679_s1 + $0x94] ss:$8 sps:$4 sm:$0xff]   ;;  %v4234_v7 = vld [vmem:[%s5679_s1 + $0x90] ss:$8 sps:$4 sm:$0xff]   ;;  %v4235_v8 = vld [vmem:[%s5679_s1 + $0x84] ss:$8 sps:$4 sm:$0xff]  }
  0x21   : > { %516 = vmatpush1.bf16.msra.mxu0 %v4228_v3  ;;  %s5692_s20 = smov (!%p392_p0, %s4829_s20), 1  ;;  %v4237_v9 = vld [vmem:[%s5679_s1 + $0x80] ss:$8 sps:$4 sm:$0xff]   ;;  %v4238_v10 = vld [vmem:[%s5679_s1 + $0x74] ss:$8 sps:$4 sm:$0xff]   ;;  %vm507_vm0 = vcmask 785408  }
  0x22   : > { %517 = vmatprep.subr.bf16.mxu0 %v4229_v4  ;;  %s4193_s28 = smul.u32 40, %s5692_s20  ;;  %v4240_v11 = vld [vmem:[%s5679_s1 + $0x70] ss:$8 sps:$4 sm:$0xff]   ;;  %v4241_v12 = vld [vmem:[%s5679_s1 + $0x64] ss:$8 sps:$4 sm:$0xff]   ;;  %v4758_v47 = vmov 0.0   ;;  %s399_s22 = scalar_lea.vmem %s5689_s11, %s5692_s20 }
  0x23   : > { %v4243_v13 = vld [vmem:[%s5679_s1 + $0x60] ss:$8 sps:$4 sm:$0xff]   ;;  %v4246_v16 = vld [vmem:[%s5679_s1 + $0x54] ss:$8 sps:$4 sm:$0xff]   ;;  %v4244_v18 = vld [vmem:[%s5679_s1 + $0x50] ss:$8 sps:$4 sm:$0xff]  }
  0x24   : > { %s4894_s16 = scalar_lea.vmem %s5678_s0, %s4193_s28  ;;  %v4249_v19 = vld [vmem:[%s5679_s1 + $0x44] ss:$8 sps:$4 sm:$0xff]   ;;  %v4247_v20 = vld [vmem:[%s5679_s1 + $0x40] ss:$8 sps:$4 sm:$0xff]   ;;  %v4252_v21 = vld [vmem:[%s5679_s1 + $0x34] ss:$8 sps:$4 sm:$0xff]  }
  0x25   : > { %518 = vmatpush1.bf16.msra.mxu0 %v4231_v5  ;;  %v416_v14 = vld [vmem:[%s4894_s16 + $0x11] sm:$0xff]  ;;  %v417_v15 = vld [vmem:[%s4894_s16 + $0x19] sm:$0xff]  ;;  %v4255_v23 = vld [vmem:[%s5679_s1 + $0x24] ss:$8 sps:$4 sm:$0xff]   ;;  %401 = vst [vmem:[#allocation2 + $0x28] sm:$0xff] %v4758_v47  ;;  %vm875_vm2 = vcmask 130048  }
  0x26   : > { %519 = vmatprep.subr.bf16.mxu0 %v4232_v6  ;;  %v418_v17 = vpack.c.bf16 %v417_v15, %v416_v14  ;;  %v4250_v22 = vld [vmem:[%s5679_s1 + $0x30] ss:$8 sps:$4 sm:$0xff]   ;;  %v4253_v24 = vld [vmem:[%s5679_s1 + $0x20] ss:$8 sps:$4 sm:$0xff]   ;;  %v4258_v25 = vld [vmem:[%s5679_s1 + $0x14] ss:$8 sps:$4 sm:$0xff]  }
  0x27   : > { %v4256_v26 = vld [vmem:[%s5679_s1 + $0x10] ss:$8 sps:$4 sm:$0xff]   ;;  %v4261_v27 = vld [vmem:[%s5679_s1 + $0x4] ss:$8 sps:$4 sm:$0xff]   ;;  %v4259_v28 = vld [vmem:[%s5679_s1] ss:$8 sps:$4 sm:$0xff]  }
  0x28   : > { %v413_v29 = vld [vmem:[%s4894_s16] sm:$0xff]  ;;  %v414_v30 = vld [vmem:[%s4894_s16 + $0x8] sm:$0xff]  ;;  %v4264_v31 = vld [vmem:[%s5679_s1 + $0x114] ss:$8 sps:$4 sm:$0xff]   ;;  %402 = vst [vmem:[#allocation2 + $0x10] sm:$0xff] %v4758_v47  ;;  %vm1806_vm4 = vcmask 1043456  }
  0x29   : > { %520 = vmatpush1.bf16.msra.mxu0 %v4234_v7  ;;  %v4262_v32 = vld [vmem:[%s5679_s1 + $0x110] ss:$8 sps:$4 sm:$0xff]   ;;  %v415_v33 = vpack.c.bf16 %v414_v30, %v413_v29  ;;  %v4267_v34 = vld [vmem:[%s5679_s1 + $0x104] ss:$8 sps:$4 sm:$0xff]   ;;  %v4265_v35 = vld [vmem:[%s5679_s1 + $0x100] ss:$8 sps:$4 sm:$0xff]  }
  0x2a   : > { %521 = vmatprep.subr.bf16.mxu0 %v4235_v8  ;;  %v4270_v36 = vld [vmem:[%s5679_s1 + $0xf4] ss:$8 sps:$4 sm:$0xff]   ;;  %v4268_v37 = vld [vmem:[%s5679_s1 + $0xf0] ss:$8 sps:$4 sm:$0xff]   ;;  %v4273_v38 = vld [vmem:[%s5679_s1 + $0xe4] ss:$8 sps:$4 sm:$0xff]  }
  0x2b   : > { %v4271_v39 = vld [vmem:[%s5679_s1 + $0xe0] ss:$8 sps:$4 sm:$0xff]   ;;  %v4276_v40 = vld [vmem:[%s5679_s1 + $0xd4] ss:$8 sps:$4 sm:$0xff]   ;;  %v4274_v41 = vld [vmem:[%s5679_s1 + $0xd0] ss:$8 sps:$4 sm:$0xff]  }
  0x2c   : > { %v4279_v42 = vld [vmem:[%s5679_s1 + $0xc4] ss:$8 sps:$4 sm:$0xff]   ;;  %v4277_v43 = vld [vmem:[%s5679_s1 + $0xc0] ss:$8 sps:$4 sm:$0xff]   ;;  %403 = vst [vmem:[#allocation2 + $0x8] sm:$0xff] %v4758_v47  ;;  %404 = vst [vmem:[#allocation2] sm:$0xff] %v4758_v47 }
  0x2d   : > { %522 = vmatpush1.bf16.msra.mxu0 %v4237_v9  ;;  %v419_v44 = vld [vmem:[%s4894_s16 + $0x1] sm:$0xff]  ;;  %v420_v45 = vld [vmem:[%s4894_s16 + $0x9] sm:$0xff]  ;;  %405 = vst [vmem:[#allocation2 + $0x18] sm:$0x3] %v4758_v47  ;;  %406 = vst [vmem:[#allocation2 + $0x20] sm:$0x3] %v4758_v47 }
  0x2e   : > { %523 = vmatprep.subr.bf16.mxu0 %v4238_v10  ;;  %v421_v46 = vpack.c.bf16 %v420_v45, %v419_v44  ;;  %407 = vst [vmem:[#allocation3] sm:$0xff] %v4758_v47  ;;  %408 = vst [vmem:[#allocation3 + $0x8] sm:$0xff] %v4758_v47  ;;  %v4280_v48 = vld [vmem:[%s5680_s2 + $0x70] ss:$8 sps:$4 sm:$0xff]   ;;  %v4282_v49 = vld [vmem:[%s5680_s2 + $0x74] ss:$8 sps:$4 sm:$0xff]  }
  0x2f   : > { %409 = vst [vmem:[#allocation3 + $0x10] sm:$0x3] %v4758_v47  ;;  %410 = vst [vmem:[#allocation3 + $0x18] sm:$0x3] %v4758_v47  ;;  %v4285_v50 = vld [vmem:[%s5680_s2 + $0x64] ss:$8 sps:$4 sm:$0xff]  }
  0x30   : > { %411 = vst [vmem:[#allocation4] sm:$0x3f] %v4758_v47  ;;  %412 = vst [vmem:[#allocation4 + $0x8] sm:$0x3f] %v4758_v47  ;;  %v4283_v51 = vld [vmem:[%s5680_s2 + $0x60] ss:$8 sps:$4 sm:$0xff]  }
  0x31   : > { %524 = vmatpush1.bf16.msra.mxu0 %v4240_v11  ;;  %v4288_v52 = vld [vmem:[%s5680_s2 + $0x54] ss:$8 sps:$4 sm:$0xff]   ;;  %v4286_v53 = vld [vmem:[%s5680_s2 + $0x50] ss:$8 sps:$4 sm:$0xff]   ;;  %v4291_v54 = vld [vmem:[%s5680_s2 + $0x44] ss:$8 sps:$4 sm:$0xff]  }
  0x32   : > { %525 = vmatprep.subr.bf16.mxu0 %v4241_v12  ;;  %v4289_v55 = vld [vmem:[%s5680_s2 + $0x40] ss:$8 sps:$4 sm:$0xff]   ;;  %v4297_v56 = vld [vmem:[%s5680_s2 + $0x34] ss:$8 sps:$4 sm:$0xff]   ;;  %v4295_v57 = vld [vmem:[%s5680_s2 + $0x30] ss:$8 sps:$4 sm:$0xff]   ;;  %v785_v12 = vlaneseq }
  0x33   : > { %v4303_v58 = vld [vmem:[%s5680_s2 + $0x24] ss:$8 sps:$4 sm:$0xff]   ;;  %v4301_v59 = vld [vmem:[%s5680_s2 + $0x20] ss:$8 sps:$4 sm:$0xff]   ;;  %v4309_v60 = vld [vmem:[%s5680_s2 + $0x14] ss:$8 sps:$4 sm:$0xff]  }
  0x34   : > { %v4307_v61 = vld [vmem:[%s5680_s2 + $0x10] ss:$8 sps:$4 sm:$0xff]   ;;  %v4315_v62 = vld [vmem:[%s5680_s2 + $0x4] ss:$8 sps:$4 sm:$0xff]   ;;  %v4313_v63 = vld [vmem:[%s5680_s2] ss:$8 sps:$4 sm:$0xff]  }
  0x35   : > { %526 = vmatpush1.bf16.msra.mxu0 %v4243_v13  ;;  %v4321_v0 = vld [vmem:[%s5680_s2 + $0xf4] ss:$8 sps:$4 sm:$0xff]   ;;  %v4319_v2 = vld [vmem:[%s5680_s2 + $0xf0] ss:$8 sps:$4 sm:$0xff]   ;;  %v4327_v3 = vld [vmem:[%s5680_s2 + $0xe4] ss:$8 sps:$4 sm:$0xff]  }
  0x36   : > { %621 = vmatprep.subr.bf16.mxu0 %v4246_v16  ;;  %v4325_v4 = vld [vmem:[%s5680_s2 + $0xe0] ss:$8 sps:$4 sm:$0xff]   ;;  %v4333_v5 = vld [vmem:[%s5680_s2 + $0xd4] ss:$8 sps:$4 sm:$0xff]   ;;  %v4331_v6 = vld [vmem:[%s5680_s2 + $0xd0] ss:$8 sps:$4 sm:$0xff]  }
  0x37   : > { %v4339_v7 = vld [vmem:[%s5680_s2 + $0xc4] ss:$8 sps:$4 sm:$0xff]   ;;  %v4337_v8 = vld [vmem:[%s5680_s2 + $0xc0] ss:$8 sps:$4 sm:$0xff]   ;;  %v5067_v15 = vshrl.u32 %v785_v12, 7  ;;  %vm1803_vm5 = vcmask 64512  }
  0x38   : > { %3727 = vmatmul.mubr.msk.bf16.vlgmr.msra.gmra.mxu0 %vm507_vm0, %v418_v17  ;;  %vm2752_vm6 = vcmp.lt.s32.totalorder %v785_v12, 256  ;;  %vm3608_vm7 = vcmask 1041408   ;;  %vm3634_vm8 = vcmask 0  }
  0x39   : > { %622 = vmatpush1.bf16.msra.mxu0 %v4244_v18  ;;  %649 = vmatprep.mubr.bf16.mxu0 %v4757_v1  ;;  %v5070_v17 = vsub.s32 0, %v5067_v15  ;;  %v783_v18 = vld [vmem:[%s5683_s5] sm:$0x77]  ;;  %v5093_v44 = vsub.s32 2, %v5067_v15 }
  0x3a   : > { %623 = vmatprep.subr.bf16.mxu0 %v4249_v19  ;;  %v5076_v19 = vsub.s32 4, %v5067_v15 }
  0x3d   : > { %624 = vmatpush1.bf16.msra.mxu0 %v4247_v20 }
  0x3e   : > { %625 = vmatprep.subr.bf16.mxu0 %v4252_v21  ;;  %v788_v21 = vrot.slane %v783_v18, %v5070_v17 }
  0x41   : > { %626 = vmatpush1.bf16.msra.mxu0 %v4250_v22  ;;  %v792_v22 = vrot.slane %v783_v18, %v5076_v19 }
  0x42   : > { %627 = vmatprep.subr.bf16.mxu0 %v4255_v23 }
  0x43   : > { %v802_v30 = vrot.slane %v792_v22, %v5070_v17  ;;  %v4292_v22 = vld [vmem:[%s5680_s2 + $0x170] ss:$8 sps:$4 sm:$0xff]  }
  0x45   : > { %628 = vmatpush1.bf16.msra.mxu0 %v4253_v24 }
  0x46   : > { %629 = vmatprep.subr.bf16.mxu0 %v4258_v25  ;;  %v798_v25 = vrot.slane %v788_v21, %v5070_v17 }
  0x49   : > { %630 = vmatpush1.bf16.msra.mxu0 %v4256_v26 }
  0x4a   : > { %631 = vmatprep.subr.bf16.mxu0 %v4261_v27  ;;  %v5082_v27 = vsub.s32 5, %v5067_v15 }
  0x4d   : > { %632 = vmatpush1.bf16.msra.mxu0 %v4259_v28 }
  0x4e   : > { %740 = vmatprep.subr.bf16.mxu0 %v4264_v31 }
  0x50   : > { %3740 = vmatmul.mubr.msk.bf16.vlgmr.msra.gmra.mxu0 %vm507_vm0, %v415_v33 }
  0x51   : > { %741 = vmatpush1.bf16.msra.mxu0 %v4262_v32  ;;  %768 = vmatprep.mubr.bf16.mxu0 %v4757_v1  ;;  %v5086_v32 = vsub.s32 1, %v5067_v15 }
  0x52   : > { %742 = vmatprep.subr.bf16.mxu0 %v4267_v34 }
  0x53   : > { %v818_v45 = vrot.slane %v783_v18, %v5086_v32 }
  0x55   : > { %743 = vmatpush1.bf16.msra.mxu0 %v4265_v35 }
  0x56   : > { %744 = vmatprep.subr.bf16.mxu0 %v4270_v36 }
  0x59   : > { %745 = vmatpush1.bf16.msra.mxu0 %v4268_v37  ;;  %v822_v37 = vrot.slane %v783_v18, %v5082_v27 }
  0x5a   : > { %746 = vmatprep.subr.bf16.mxu0 %v4273_v38 }
  0x5d   : > { %747 = vmatpush1.bf16.msra.mxu0 %v4271_v39 }
  0x5e   : > { %748 = vmatprep.subr.bf16.mxu0 %v4276_v40 }
  0x61   : > { %749 = vmatpush1.bf16.msra.mxu0 %v4274_v41  ;;  %v5090_v41 = vsub.s32 6, %v5067_v15 }
  0x62   : > { %750 = vmatprep.subr.bf16.mxu0 %v4279_v42 }
  0x65   : > { %751 = vmatpush1.bf16.msra.mxu0 %v4277_v43 }
  0x66   : > { %1442 = vmatprep.subr.bf16.mxu0 %v4282_v49 }
  0x68   : > { %3765 = vmatmul.mubr.msk.bf16.vlgmr.msra.gmra.mxu0 %vm507_vm0, %v421_v46 }
  0x69   : > { %1443 = vmatpush1.bf16.msra.mxu0 %v4280_v48 }
  0x6a   : > { %1444 = vmatprep.subr.bf16.mxu0 %v4285_v50  ;;  %v865_v50 = vmul.u32 2, %v5067_v15 }
  0x6d   : > { %1445 = vmatpush1.bf16.msra.mxu0 %v4283_v51  ;;  %v832_v51 = vrot.slane %v822_v37, %v5086_v32  ;;  %v4334_v37 = vld [vmem:[%s5680_s2 + $0x100] ss:$8 sps:$4 sm:$0xff]  }
  0x6e   : > { %1446 = vmatprep.subr.bf16.mxu0 %v4288_v52 }
  0x71   : > { %1447 = vmatpush1.bf16.msra.mxu0 %v4286_v53 }
  0x72   : > { %1448 = vmatprep.subr.bf16.mxu0 %v4291_v54 }
  0x75   : > { %1449 = vmatpush1.bf16.msra.mxu0 %v4289_v55  ;;  %v844_v55 = vrot.slane %v783_v18, %v5090_v41 }
  0x76   : > { %1450 = vmatprep.subr.bf16.mxu0 %v4297_v56 }
  0x79   : > { %1451 = vmatpush1.bf16.msra.mxu0 %v4295_v57  ;;  %v828_v57 = vrot.slane %v818_v45, %v5086_v32  ;;  %v4346_v45 = vld [vmem:[%s5680_s2 + $0x1e0] ss:$8 sps:$4 sm:$0xff]  }
  0x7a   : > { %1452 = vmatprep.subr.bf16.mxu0 %v4303_v58  ;;  %v840_v58 = vrot.slane %v783_v18, %v5093_v44  ;;  %v4294_v18 = vld [vmem:[%s5680_s2 + $0x174] ss:$8 sps:$4 sm:$0xff]  }
  0x7d   : > { %1453 = vmatpush1.bf16.msra.mxu0 %v4301_v59 }
  0x7e   : > { %1454 = vmatprep.subr.bf16.mxu0 %v4309_v60 }
  0x81   : > { %1455 = vmatpush1.bf16.msra.mxu0 %v4307_v61  ;;  %v864_v61 = vand.u32 127, %v785_v12 }
  0x82   : > { %1456 = vmatprep.subr.bf16.mxu0 %v4315_v62  ;;  %v866_v62 = vadd.s32 1, %v865_v50 }
  0x83   : > { %vm871_vm3 = vcmp.eq.s32.totalorder %v864_v61, %v865_v50  ;;  %v4352_v50 = vld [vmem:[%s5680_s2 + $0x1d0] ss:$8 sps:$4 sm:$0xff]  }
  0x84   : > { %vm867_vm1 = vcmp.eq.s32.totalorder %v864_v61, %v866_v62  ;;  %v4372_v61 = vld [vmem:[%s5680_s2 + $0x194] ss:$8 sps:$4 sm:$0xff]   ;;  %v4370_v62 = vld [vmem:[%s5680_s2 + $0x190] ss:$8 sps:$4 sm:$0xff]  }
  0x85   : > { %1457 = vmatpush1.bf16.msra.mxu0 %v4313_v63 }
  0x86   : > { %1458 = vmatprep.subr.bf16.mxu0 %v4321_v0 }
  0x89   : > { %1459 = vmatpush2.bf16.msra.mxu0 %v4319_v2  ;;  %v854_v2 = vrot.slane %v844_v55, %v5093_v44  ;;  %v4363_v55 = vld [vmem:[%s5680_s2 + $0x84] ss:$8 sps:$4 sm:$0xff]  }
  0x8a   : > { %1460 = vmatprep.subr.bf16.mxu0 %v4327_v3 }
  0x8d   : > { %1461 = vmatpush2.bf16.msra.mxu0 %v4325_v4 }
  0x8e   : > { %1462 = vmatprep.subr.bf16.mxu0 %v4333_v5  ;;  %v850_v5 = vrot.slane %v840_v58, %v5093_v44  ;;  %v4364_v58 = vld [vmem:[%s5680_s2 + $0x1b0] ss:$8 sps:$4 sm:$0xff]  }
  0x91   : > { %1463 = vmatpush2.bf16.msra.mxu0 %v4331_v6 }
  0x92   : > { %1464 = vmatprep.subr.bf16.mxu0 %v4339_v7 }
  0x95   : > { %1465 = vmatpush2.bf16.msra.mxu0 %v4337_v8 }
  0xf8   : > { %v545_v9 = vpop.f32.mrf.mxu0 }
  0xfa   : > { %v547_v10 = vpop.f32.mrf.mxu0 }
  0xfc   : > { %v549_v11 = vpop.f32.mrf.mxu0 }
  0xfe   : > { %v551_v13 = vpop.f32.mrf.mxu0 }
 0x110   : > { %v651_v14 = vpop.f32.mrf.mxu0 }
 0x111   : > { %v652_v24 = vadd.f32 %v651_v14, %v545_v9 }
 0x112   : > { %v653_v16 = vpop.f32.mrf.mxu0 }
 0x113   : > { %v654_v28 = vadd.f32 %v653_v16, %v547_v10 }
 0x114   : > { %v655_v20 = vpop.f32.mrf.mxu0 }
 0x115   : > { %v656_v33 = vadd.f32 %v655_v20, %v549_v11  ;;  %v3766_v11 = vsel %vm867_vm1, 1.0, %v4758_v47  ;;  %v3767_v20 = vsel %vm871_vm3, 1.0, %v4758_v47  ;;  %v4306_v47 = vld [vmem:[%s5680_s2 + $0x154] ss:$8 sps:$4 sm:$0xff]  }
 0x116   : > { %v657_v23 = vpop.f32.mrf.mxu0  ;;  %v5105_v16 = vpack.c.bf16 %v3766_v11, %v3766_v11  ;;  %v5113_v21 = vpack.c.bf16 %v3767_v20, %v3767_v20 }
 0x117   : > { %v658_v38 = vadd.f32 %v657_v23, %v551_v13  ;;  %v4300_v23 = vld [vmem:[%s5680_s2 + $0x164] ss:$8 sps:$4 sm:$0xff]  }
 0x128   : > { %v770_v26 = vpop.f32.mrf.mxu0 }
 0x129   : > { %v779_v29 = vadd.f32 %v770_v26, %v652_v24  ;;  %v4298_v24 = vld [vmem:[%s5680_s2 + $0x160] ss:$8 sps:$4 sm:$0xff]   ;;  %v4312_v26 = vld [vmem:[%s5680_s2 + $0x144] ss:$8 sps:$4 sm:$0xff]  }
 0x12a   : > { %v772_v31 = vpop.f32.mrf.mxu0 }
 0x12b   : > { %v803_v34 = vadd.f32 %v798_v25, %v779_v29  ;;  %v780_v35 = vadd.f32 %v772_v31, %v654_v28  ;;  %v4310_v28 = vld [vmem:[%s5680_s2 + $0x140] ss:$8 sps:$4 sm:$0xff]   ;;  %v4318_v29 = vld [vmem:[%s5680_s2 + $0x134] ss:$8 sps:$4 sm:$0xff]   ;;  %v4324_v31 = vld [vmem:[%s5680_s2 + $0x124] ss:$8 sps:$4 sm:$0xff]  }
 0x12c   : > { %v774_v36 = vpop.f32.mrf.mxu0 }
 0x12d   : > { %v804_v39 = vadd.f32 %v802_v30, %v780_v35  ;;  %v781_v40 = vadd.f32 %v774_v36, %v656_v33  ;;  %v807_v42 = vmul.f32 0.2, %v803_v34  ;;  %v4322_v33 = vld [vmem:[%s5680_s2 + $0x120] ss:$8 sps:$4 sm:$0xff]   ;;  %v4328_v35 = vld [vmem:[%s5680_s2 + $0x110] ss:$8 sps:$4 sm:$0xff]  }
 0x12e   : > { %v776_v43 = vpop.f32.mrf.mxu0  ;;  %v4336_v36 = vld [vmem:[%s5680_s2 + $0x104] ss:$8 sps:$4 sm:$0xff]  }
 0x12f   : > { %v808_v46 = vmul.f32 0.2, %v804_v39  ;;  %v805_v48 = vadd.f32 %v798_v25, %v781_v40  ;;  %v782_v49 = vadd.f32 %v776_v43, %v658_v38  ;;  %v811_v56 = vmax.f32 %v803_v34, %v807_v42  ;;  %v4304_v25 = vld [vmem:[%s5680_s2 + $0x150] ss:$8 sps:$4 sm:$0xff]   ;;  %v4330_v34 = vld [vmem:[%s5680_s2 + $0x114] ss:$8 sps:$4 sm:$0xff]  }
 0x130   : > { %v4342_v38 = vld [vmem:[%s5680_s2 + $0x1f4] ss:$8 sps:$4 sm:$0xff]   ;;  %v4343_v42 = vld [vmem:[%s5680_s2 + $0xb0] ss:$8 sps:$4 sm:$0xff]   ;;  %v4348_v43 = vld [vmem:[%s5680_s2 + $0x1e4] ss:$8 sps:$4 sm:$0xff]  }
 0x131   : > { %v812_v52 = vmax.f32 %v804_v39, %v808_v46  ;;  %v809_v53 = vmul.f32 0.2, %v805_v48  ;;  %v806_v54 = vadd.f32 %v802_v30, %v782_v49  ;;  %v833_v4 = vmul.f32 %v828_v57, %v811_v56  ;;  %v4316_v30 = vld [vmem:[%s5680_s2 + $0x130] ss:$8 sps:$4 sm:$0xff]   ;;  %v4345_v40 = vld [vmem:[%s5680_s2 + $0xb4] ss:$8 sps:$4 sm:$0xff]  }
 0x132   : > { %v4340_v39 = vld [vmem:[%s5680_s2 + $0x1f0] ss:$8 sps:$4 sm:$0xff]   ;;  %1466 = vmatprep.subr.bf16.mxu0 %v4345_v40  ;;  %v4351_v46 = vld [vmem:[%s5680_s2 + $0xa4] ss:$8 sps:$4 sm:$0xff]   ;;  %v4354_v49 = vld [vmem:[%s5680_s2 + $0x1d4] ss:$8 sps:$4 sm:$0xff]  }
 0x133   : > { %v813_v59 = vmax.f32 %v805_v48, %v809_v53  ;;  %v810_v60 = vmul.f32 0.2, %v806_v54  ;;  %v834_v0 = vmul.f32 %v832_v51, %v812_v52  ;;  %v855_v10 = vadd.f32 %v850_v5, %v833_v4  ;;  %1467 = vmatpush2.bf16.msra.mxu0 %v4343_v42  ;;  %v4349_v48 = vld [vmem:[%s5680_s2 + $0xa0] ss:$8 sps:$4 sm:$0xff]   ;;  %v4355_v52 = vld [vmem:[%s5680_s2 + $0x90] ss:$8 sps:$4 sm:$0xff]  }
 0x134   : > { %1468 = vmatprep.subr.bf16.mxu0 %v4351_v46  ;;  %v4360_v53 = vld [vmem:[%s5680_s2 + $0x1c4] ss:$8 sps:$4 sm:$0xff]   ;;  %v4361_v56 = vld [vmem:[%s5680_s2 + $0x80] ss:$8 sps:$4 sm:$0xff]   ;;  %v4376_v46 = vld [vmem:[%s5680_s2 + $0x270] ss:$8 sps:$4 sm:$0xff]  }
 0x135   : > { %v814_v63 = vmax.f32 %v806_v54, %v810_v60  ;;  %v835_v3 = vmul.f32 %v828_v57, %v813_v59  ;;  %v856_v8 = vadd.f32 %v854_v2, %v834_v0  ;;  %v4358_v54 = vld [vmem:[%s5680_s2 + $0x1c0] ss:$8 sps:$4 sm:$0xff]   ;;  %v4366_v57 = vld [vmem:[%s5680_s2 + $0x1b4] ss:$8 sps:$4 sm:$0xff]   ;;  %v4369_v59 = vld [vmem:[%s5680_s2 + $0x1a4] ss:$8 sps:$4 sm:$0xff]  }
 0x136   : > { %v4367_v60 = vld [vmem:[%s5680_s2 + $0x1a0] ss:$8 sps:$4 sm:$0xff]  }
 0x137   : > { %v836_v6 = vmul.f32 %v832_v51, %v814_v63  ;;  %v857_v7 = vadd.f32 %v850_v5, %v835_v3  ;;  %1469 = vmatpush2.bf16.msra.mxu0 %v4349_v48  ;;  %v4357_v51 = vld [vmem:[%s5680_s2 + $0x94] ss:$8 sps:$4 sm:$0xff]   ;;  %v4375_v63 = vld [vmem:[%s5680_s2 + $0x184] ss:$8 sps:$4 sm:$0xff]   ;;  %v4373_v0 = vld [vmem:[%s5680_s2 + $0x180] ss:$8 sps:$4 sm:$0xff]  }
 0x138   : > { %1470 = vmatprep.subr.bf16.mxu0 %v4357_v51 }
 0x139   : > { %v858_v9 = vadd.f32 %v854_v2, %v836_v6  ;;  %v859_v14 = vpack.c.bf16 %v857_v7, %v855_v10  ;;  %v4378_v2 = vld [vmem:[%s5680_s2 + $0x274] ss:$8 sps:$4 sm:$0xff]  }
 0x13b   : > { %v860_v13 = vpack.c.bf16 %v858_v9, %v856_v8  ;;  %1471 = vmatpush2.bf16.msra.mxu0 %v4355_v52  ;;  %v4379_v52 = vld [vmem:[%s5680_s2 + $0x260] ss:$8 sps:$4 sm:$0xff]  }
 0x13c   : > { %1472 = vmatprep.subr.bf16.mxu0 %v4363_v55  ;;  %v4387_v55 = vld [vmem:[%s5680_s2 + $0x244] ss:$8 sps:$4 sm:$0xff]  }
 0x13d   : > { %893 = vmatprep.subr.bf16.mxu1 %v860_v13 }
 0x13e   : > { %894 = vmatpush1.bf16.msra.mxu1 %v859_v14 }
 0x13f   : > { %947 = vmatprep.subr.bf16.mxu1 %v860_v13  ;;  %1473 = vmatpush2.bf16.msra.mxu0 %v4361_v56  ;;  %v4385_v56 = vld [vmem:[%s5680_s2 + $0x240] ss:$8 sps:$4 sm:$0xff]  }
 0x141   : > { %3768 = vmatmul.mubr.msk.bf16.vlgmr.msra.gmra.mxu1 %vm875_vm2, %v5105_v16 }
 0x142   : > { %948 = vmatpush1.bf16.msra.mxu1 %v859_v14  ;;  %965 = vmatprep.mubr.bf16.mxu1 %v4757_v1 }
 0x143   : > { %1241 = vmatprep.subr.bf16.mxu1 %v4294_v18 }
 0x149   : > { %3769 = vmatmul.mubr.msk.bf16.vlgmr.msra.gmra.mxu1 %vm875_vm2, %v5113_v21 }
 0x14a   : > { %1242 = vmatpush1.bf16.msra.mxu1 %v4292_v22 }
 0x14b   : > { %1243 = vmatprep.subr.bf16.mxu1 %v4300_v23 }
 0x14e   : > { %1244 = vmatpush1.bf16.msra.mxu1 %v4298_v24 }
 0x14f   : > { %1245 = vmatprep.subr.bf16.mxu1 %v4306_v47 }
 0x152   : > { %1246 = vmatpush1.bf16.msra.mxu1 %v4304_v25 }
 0x153   : > { %1247 = vmatprep.subr.bf16.mxu1 %v4312_v26 }
 0x156   : > { %1248 = vmatpush1.bf16.msra.mxu1 %v4310_v28 }
 0x157   : > { %1249 = vmatprep.subr.bf16.mxu1 %v4318_v29 }
 0x15a   : > { %1250 = vmatpush1.bf16.msra.mxu1 %v4316_v30 }
 0x15b   : > { %1251 = vmatprep.subr.bf16.mxu1 %v4324_v31 }
 0x15e   : > { %1252 = vmatpush1.bf16.msra.mxu1 %v4322_v33 }
 0x15f   : > { %1253 = vmatprep.subr.bf16.mxu1 %v4330_v34 }
 0x162   : > { %1254 = vmatpush1.bf16.msra.mxu1 %v4328_v35 }
 0x163   : > { %1255 = vmatprep.subr.bf16.mxu1 %v4336_v36 }
 0x166   : > { %1256 = vmatpush1.bf16.msra.mxu1 %v4334_v37 }
 0x167   : > { %1257 = vmatprep.subr.bf16.mxu1 %v4342_v38 }
 0x16a   : > { %1258 = vmatpush2.bf16.msra.mxu1 %v4340_v39 }
 0x16b   : > { %1259 = vmatprep.subr.bf16.mxu1 %v4348_v43 }
 0x16e   : > { %1260 = vmatpush2.bf16.msra.mxu1 %v4346_v45 }
 0x16f   : > { %1261 = vmatprep.subr.bf16.mxu1 %v4354_v49 }
 0x172   : > { %1262 = vmatpush2.bf16.msra.mxu1 %v4352_v50  ;;  %v4381_v50 = vld [vmem:[%s5680_s2 + $0x264] ss:$8 sps:$4 sm:$0xff]  }
 0x173   : > { %1263 = vmatprep.subr.bf16.mxu1 %v4360_v53  ;;  %v4384_v53 = vld [vmem:[%s5680_s2 + $0x254] ss:$8 sps:$4 sm:$0xff]  }
 0x176   : > { %1264 = vmatpush2.bf16.msra.mxu1 %v4358_v54  ;;  %v4382_v54 = vld [vmem:[%s5680_s2 + $0x250] ss:$8 sps:$4 sm:$0xff]  }
 0x177   : > { %1265 = vmatprep.subr.bf16.mxu1 %v4366_v57  ;;  %v4390_v57 = vld [vmem:[%s5680_s2 + $0x234] ss:$8 sps:$4 sm:$0xff]  }
 0x17a   : > { %1266 = vmatpush2.bf16.msra.mxu1 %v4364_v58  ;;  %v4388_v58 = vld [vmem:[%s5680_s2 + $0x230] ss:$8 sps:$4 sm:$0xff]  }
 0x17b   : > { %1267 = vmatprep.subr.bf16.mxu1 %v4369_v59  ;;  %v4393_v59 = vld [vmem:[%s5680_s2 + $0x224] ss:$8 sps:$4 sm:$0xff]  }
 0x17e   : > { %1268 = vmatpush2.bf16.msra.mxu1 %v4367_v60  ;;  %v4391_v60 = vld [vmem:[%s5680_s2 + $0x220] ss:$8 sps:$4 sm:$0xff]  }
 0x17f   : > { %1269 = vmatprep.subr.bf16.mxu1 %v4372_v61  ;;  %v4396_v61 = vld [vmem:[%s5680_s2 + $0x214] ss:$8 sps:$4 sm:$0xff]  }
 0x182   : > { %1270 = vmatpush2.bf16.msra.mxu1 %v4370_v62  ;;  %v4394_v62 = vld [vmem:[%s5680_s2 + $0x210] ss:$8 sps:$4 sm:$0xff]  }
 0x183   : > { %1271 = vmatprep.subr.bf16.mxu1 %v4375_v63  ;;  %v4399_v63 = vld [vmem:[%s5680_s2 + $0x204] ss:$8 sps:$4 sm:$0xff]  }
 0x186   : > { %1272 = vmatpush2.bf16.msra.mxu1 %v4373_v0  ;;  %v4397_v0 = vld [vmem:[%s5680_s2 + $0x200] ss:$8 sps:$4 sm:$0xff]  }
 0x187   : > { %1692 = vmatprep.subr.bf16.mxu1 %v4378_v2  ;;  %v4402_v2 = vld [vmem:[%s5680_s2 + $0x2f4] ss:$8 sps:$4 sm:$0xff]  }
 0x201   : > { %v913_v3 = vpop.f32.mrf.mxu1 }
 0x202   : > { %v922_v4 = vrot.slane %v913_v3, 7  ;;  %v4400_v3 = vld [vmem:[%s5680_s2 + $0x2f0] ss:$8 sps:$4 sm:$0xff]  }
 0x203   : > { %v915_v5 = vpop.f32.mrf.mxu1 }
 0x204   : > { %926 = vst [vmem:[#allocation2 + $0x28] sm:$0xfe] %v922_v4  ;;  %928 = vst [vmem:[#allocation2 + $0x8] sm:$0x1] %v922_v4  ;;  %v923_v6 = vrot.slane %v915_v5, 7 }
 0x205   : > { %v917_v7 = vpop.f32.mrf.mxu1  ;;  %v4405_v4 = vld [vmem:[%s5680_s2 + $0x2e4] ss:$8 sps:$4 sm:$0xff]   ;;  %v4403_v5 = vld [vmem:[%s5680_s2 + $0x2e0] ss:$8 sps:$4 sm:$0xff]  }
 0x206   : > { %927 = vst [vmem:[#allocation2 + $0x10] sm:$0xfe] %v923_v6  ;;  %929 = vst [vmem:[#allocation2] sm:$0x1] %v923_v6  ;;  %v4408_v6 = vld [vmem:[%s5680_s2 + $0x2d4] ss:$8 sps:$4 sm:$0xff]  }
 0x207   : > { %v918_v8 = vpop.f32.mrf.mxu1  ;;  %v4406_v7 = vld [vmem:[%s5680_s2 + $0x2d0] ss:$8 sps:$4 sm:$0xff]  }
 0x208   : > { %v4411_v8 = vld [vmem:[%s5680_s2 + $0x2c4] ss:$8 sps:$4 sm:$0xff]  }
 0x209   : > { %v967_v9 = vpop.f32.mrf.mxu1 }
 0x20a   : > { %v976_v10 = vrot.slane %v967_v9, 7  ;;  %v4409_v9 = vld [vmem:[%s5680_s2 + $0x2c0] ss:$8 sps:$4 sm:$0xff]  }
 0x20b   : > { %v969_v11 = vpop.f32.mrf.mxu1  ;;  %v984_v14 = vld [vmem:[#allocation2 + $0x28] sm:$0xff] }
 0x20c   : > { %980 = vst [vmem:[#allocation2 + $0x8] sm:$0xfe] %v976_v10  ;;  %982 = vst [vmem:[#allocation2 + $0x18] sm:$0x1] %v976_v10  ;;  %v977_v13 = vrot.slane %v969_v11, 7  ;;  %v986_v24 = vpack.c.bf16 %v984_v14, %v984_v14 }
 0x20d   : > { %v971_v18 = vpop.f32.mrf.mxu1  ;;  %v985_v20 = vld [vmem:[#allocation2 + $0x10] sm:$0xff]  ;;  %v997_v25 = vld [vmem:[#allocation2] sm:$0x1]  ;;  %v994_v14 = vld [vmem:[#allocation2 + $0x28] sm:$0xfe] }
 0x20e   : > { %981 = vst [vmem:[#allocation2] sm:$0xfe] %v977_v13  ;;  %983 = vst [vmem:[#allocation2 + $0x20] sm:$0x1] %v977_v13  ;;  %v987_v22 = vpack.c.bf16 %v985_v20, %v985_v20  ;;  %v995_v47 = vld [vmem:[#allocation2 + $0x10] sm:$0xfe] }
 0x20f   : > { %v972_v23 = vpop.f32.mrf.mxu1  ;;  %v999_v26 = vpack.c.bf16 %v997_v25, %v995_v47  ;;  %v4414_v10 = vld [vmem:[%s5680_s2 + $0x2b4] ss:$8 sps:$4 sm:$0xff]   ;;  %v4412_v11 = vld [vmem:[%s5680_s2 + $0x2b0] ss:$8 sps:$4 sm:$0xff]   ;;  %v4417_v13 = vld [vmem:[%s5680_s2 + $0x2a4] ss:$8 sps:$4 sm:$0xff]  }
 0x210   : > { %1474 = vmatprep.mubr.bf16.mxu0 %v987_v22  ;;  %v996_v18 = vld [vmem:[#allocation2 + $0x8] sm:$0x1]  ;;  %v4420_v22 = vld [vmem:[%s5680_s2 + $0x294] ss:$8 sps:$4 sm:$0xff]   ;;  %v4423_v47 = vld [vmem:[%s5680_s2 + $0x284] ss:$8 sps:$4 sm:$0xff]  }
 0x211   : > { %1475 = vmatmul.mubr.bf16.vlgmr.msra.gmra.mxu0 %v986_v24  ;;  %v1526_v36 = vshll.u32 %v999_v26, 16  ;;  %v1524_v48 = vshrl.u32 %v999_v26, 16  ;;  %v4415_v20 = vld [vmem:[%s5680_s2 + $0x2a0] ss:$8 sps:$4 sm:$0xff]   ;;  %v998_v23 = vpack.c.bf16 %v996_v18, %v994_v14  ;;  %v4418_v24 = vld [vmem:[%s5680_s2 + $0x290] ss:$8 sps:$4 sm:$0xff]  }
 0x212   : > { %1896 = vmatprep.mubr.bf16.mxu0 %v4757_v1  ;;  %v4421_v26 = vld [vmem:[%s5680_s2 + $0x280] ss:$8 sps:$4 sm:$0xff]   ;;  %v4429_v14 = vld [vmem:[%s5681_s3 + $0x74] ss:$8 sps:$4 sm:$0xff]  }
 0x213   : > { %v988_v28 = vld [vmem:[#allocation2 + $0x8] sm:$0xfe]  ;;  %v990_v29 = vld [vmem:[#allocation2 + $0x18] sm:$0x1]  ;;  %v1528_v42 = vrot.slane %v1526_v36, 1  ;;  %v1519_v25 = vshll.u32 %v998_v23, 16 }
 0x214   : > { %v992_v30 = vpack.c.bf16 %v990_v29, %v988_v28  ;;  %v1517_v29 = vshrl.u32 %v998_v23, 16  ;;  %v4432_v23 = vld [vmem:[%s5681_s3 + $0x164] ss:$8 sps:$4 sm:$0xff]  }
 0x215   : > { %v989_v31 = vld [vmem:[#allocation2] sm:$0xfe]  ;;  %v991_v33 = vld [vmem:[#allocation2 + $0x20] sm:$0x1]  ;;  %v1529_v51 = vor.u32 %v1528_v42, %v1524_v48  ;;  %v1521_v28 = vrot.slane %v1519_v25, 1 }
 0x216   : > { %v993_v34 = vpack.c.bf16 %v991_v33, %v989_v31  ;;  %v1068_v35 = vshll.u32 %v992_v30, 16  ;;  %v1066_v43 = vshrl.u32 %v992_v30, 16  ;;  %v1735_v42 = vld [vmem:[%s5684_s6] sm:$0x77] }
 0x217   : > { %v1522_v30 = vor.u32 %v1521_v28, %v1517_v29  ;;  %v4433_v25 = vld [vmem:[%s5681_s3 + $0x60] ss:$8 sps:$4 sm:$0xff]   ;;  %v4439_v28 = vld [vmem:[%s5681_s3 + $0x50] ss:$8 sps:$4 sm:$0xff]   ;;  %v4444_v29 = vld [vmem:[%s5681_s3 + $0x144] ss:$8 sps:$4 sm:$0xff]  }
 0x218   : > { %v1075_v37 = vshll.u32 %v993_v34, 16  ;;  %v1070_v38 = vrot.slane %v1068_v35, 1  ;;  %v1073_v39 = vshrl.u32 %v993_v34, 16 }
 0x21a   : > { %v1077_v40 = vrot.slane %v1075_v37, 1  ;;  %v1071_v49 = vor.u32 %v1070_v38, %v1066_v43  ;;  %v1740_v43 = vrot.slane %v1735_v42, %v5070_v17 }
 0x21c   : > { %v1078_v45 = vor.u32 %v1077_v40, %v1073_v39 }
 0x21e   : > { %1273 = vmatprep.mubr.bf16.mxu1 %v1078_v45  ;;  %v1744_v45 = vrot.slane %v1735_v42, %v5076_v19 }
 0x21f   : > { %1274 = vmatmul.mubr.bf16.vlgmr.msra.gmra.mxu1 %v1071_v49 }
 0x220   : > { %1693 = vmatpush1.bf16.msra.mxu1 %v4376_v46  ;;  %1724 = vmatprep.mubr.bf16.mxu1 %v1529_v51  ;;  %v1750_v46 = vrot.slane %v1740_v43, %v5070_v17  ;;  %v1754_v51 = vrot.slane %v1744_v45, %v5070_v17  ;;  %v4462_v43 = vld [vmem:[%s5681_s3 + $0x114] ss:$8 sps:$4 sm:$0xff]  }
 0x221   : > { %1694 = vmatprep.subr.bf16.mxu1 %v4381_v50  ;;  %v1764_v50 = vrot.slane %v1735_v42, %v5086_v32  ;;  %v4465_v45 = vld [vmem:[%s5681_s3 + $0x14] ss:$8 sps:$4 sm:$0xff]  }
 0x224   : > { %1695 = vmatpush1.bf16.msra.mxu1 %v4379_v52 }
 0x225   : > { %1696 = vmatprep.subr.bf16.mxu1 %v4384_v53 }
 0x228   : > { %1697 = vmatpush1.bf16.msra.mxu1 %v4382_v54 }
 0x229   : > { %1698 = vmatprep.subr.bf16.mxu1 %v4387_v55  ;;  %v1768_v55 = vrot.slane %v1735_v42, %v5082_v27 }
 0x22c   : > { %1699 = vmatpush1.bf16.msra.mxu1 %v4385_v56  ;;  %v1784_v56 = vrot.slane %v1735_v42, %v5093_v44 }
 0x22d   : > { %1700 = vmatprep.subr.bf16.mxu1 %v4390_v57 }
 0x230   : > { %1701 = vmatpush1.bf16.msra.mxu1 %v4388_v58 }
 0x231   : > { %1702 = vmatprep.subr.bf16.mxu1 %v4393_v59  ;;  %v1774_v59 = vrot.slane %v1764_v50, %v5086_v32  ;;  %v4466_v50 = vld [vmem:[%s5681_s3 + $0x100] ss:$8 sps:$4 sm:$0xff]  }
 0x234   : > { %1703 = vmatpush1.bf16.msra.mxu1 %v4391_v60 }
 0x235   : > { %1704 = vmatprep.subr.bf16.mxu1 %v4396_v61  ;;  %v1788_v61 = vrot.slane %v1735_v42, %v5090_v41  ;;  %v4457_v42 = vld [vmem:[%s5681_s3 + $0x20] ss:$8 sps:$4 sm:$0xff]  }
 0x238   : > { %1705 = vmatpush1.bf16.msra.mxu1 %v4394_v62 }
 0x239   : > { %1706 = vmatprep.subr.bf16.mxu1 %v4399_v63 }
 0x23c   : > { %1707 = vmatpush1.bf16.msra.mxu1 %v4397_v0 }
 0x23d   : > { %1708 = vmatprep.subr.bf16.mxu1 %v4402_v2  ;;  %v1778_v2 = vrot.slane %v1768_v55, %v5086_v32  ;;  %v4475_v55 = vld [vmem:[%s5681_s3 + $0xf0] ss:$8 sps:$4 sm:$0xff]  }
 0x240   : > { %1709 = vmatpush2.bf16.msra.mxu1 %v4400_v3  ;;  %v1794_v3 = vrot.slane %v1784_v56, %v5093_v44  ;;  %v4480_v56 = vld [vmem:[%s5681_s3 + $0x1e4] ss:$8 sps:$4 sm:$0xff]  }
 0x241   : > { %1710 = vmatprep.subr.bf16.mxu1 %v4405_v4 }
 0x244   : > { %1711 = vmatpush2.bf16.msra.mxu1 %v4403_v5 }
 0x245   : > { %1712 = vmatprep.subr.bf16.mxu1 %v4408_v6  ;;  %v1798_v6 = vrot.slane %v1788_v61, %v5093_v44  ;;  %v4489_v61 = vld [vmem:[%s5681_s3 + $0xd4] ss:$8 sps:$4 sm:$0xff]  }
 0x248   : > { %1713 = vmatpush2.bf16.msra.mxu1 %v4406_v7 }
 0x249   : > { %1714 = vmatprep.subr.bf16.mxu1 %v4411_v8 }
 0x24c   : > { %1715 = vmatpush2.bf16.msra.mxu1 %v4409_v9 }
 0x24d   : > { %1716 = vmatprep.subr.bf16.mxu1 %v4414_v10 }
 0x250   : > { %1717 = vmatpush2.bf16.msra.mxu1 %v4412_v11 }
 0x251   : > { %1718 = vmatprep.subr.bf16.mxu1 %v4417_v13  ;;  %v4426_v13 = vld [vmem:[%s5681_s3 + $0x174] ss:$8 sps:$4 sm:$0xff]  }
 0x254   : > { %1719 = vmatpush2.bf16.msra.mxu1 %v4415_v20  ;;  %v4424_v20 = vld [vmem:[%s5681_s3 + $0x170] ss:$8 sps:$4 sm:$0xff]  }
 0x255   : > { %1720 = vmatprep.subr.bf16.mxu1 %v4420_v22  ;;  %v4427_v22 = vld [vmem:[%s5681_s3 + $0x70] ss:$8 sps:$4 sm:$0xff]  }
 0x258   : > { %1721 = vmatpush2.bf16.msra.mxu1 %v4418_v24  ;;  %v4435_v24 = vld [vmem:[%s5681_s3 + $0x64] ss:$8 sps:$4 sm:$0xff]  }
 0x259   : > { %1722 = vmatprep.subr.bf16.mxu1 %v4423_v47  ;;  %v4430_v47 = vld [vmem:[%s5681_s3 + $0x160] ss:$8 sps:$4 sm:$0xff]  }
 0x25c   : > { %1723 = vmatpush2.bf16.msra.mxu1 %v4421_v26  ;;  %v4438_v26 = vld [vmem:[%s5681_s3 + $0x154] ss:$8 sps:$4 sm:$0xff]  }
 0x25f   : > { %1725 = vmatmul.mubr.bf16.vlgmr.msra.gmra.mxu1 %v1522_v30  ;;  %v4447_v30 = vld [vmem:[%s5681_s3 + $0x44] ss:$8 sps:$4 sm:$0xff]  }
 0x260   : > { %1845 = vmatprep.mubr.bf16.mxu1 %v4757_v1 }
 0x2d1   : > { %v1476_v31 = vpop.f32.mrf.mxu0 }
 0x2d3   : > { %v1478_v33 = vpop.f32.mrf.mxu0 }
 0x2d5   : > { %v1480_v34 = vpop.f32.mrf.mxu0 }
 0x2d6   : > { %v4450_v34 = vld [vmem:[%s5681_s3 + $0x134] ss:$8 sps:$4 sm:$0xff]  }
 0x2d7   : > { %v1481_v35 = vpop.f32.mrf.mxu0 }
 0x2d8   : > { %v4453_v35 = vld [vmem:[%s5681_s3 + $0x34] ss:$8 sps:$4 sm:$0xff]  }
 0x2df   : > { %v1275_v36 = vpop.f32.mrf.mxu1 }
 0x2e0   : > { %v1477_v37 = vadd.f32 %v1476_v31, %v1275_v36  ;;  %v4442_v31 = vld [vmem:[%s5681_s3 + $0x140] ss:$8 sps:$4 sm:$0xff]   ;;  %v4448_v36 = vld [vmem:[%s5681_s3 + $0x130] ss:$8 sps:$4 sm:$0xff]  }
 0x2e1   : > { %v1277_v38 = vpop.f32.mrf.mxu1 }
 0x2e2   : > { %v1479_v48 = vadd.f32 %v1478_v33, %v1277_v38  ;;  %v4445_v33 = vld [vmem:[%s5681_s3 + $0x40] ss:$8 sps:$4 sm:$0xff]   ;;  %v4456_v38 = vld [vmem:[%s5681_s3 + $0x124] ss:$8 sps:$4 sm:$0xff]  }
 0x2e3   : > { %v1279_v39 = vpop.f32.mrf.mxu1 }
 0x2e4   : > { %v4459_v39 = vld [vmem:[%s5681_s3 + $0x24] ss:$8 sps:$4 sm:$0xff]  }
 0x2e5   : > { %v1280_v40 = vpop.f32.mrf.mxu1 }
 0x2e6   : > { %v4454_v40 = vld [vmem:[%s5681_s3 + $0x120] ss:$8 sps:$4 sm:$0xff]  }
 0x31f   : > { %v1726_v1 = vpop.f32.mrf.mxu1 }
 0x320   : > { %v1733_v49 = vadd.f32 %v1726_v1, %v1477_v37  ;;  %v4451_v37 = vld [vmem:[%s5681_s3 + $0x30] ss:$8 sps:$4 sm:$0xff]  }
 0x321   : > { %v1728_v52 = vpop.f32.mrf.mxu1  ;;  %v4463_v1 = vld [vmem:[%s5681_s3 + $0x10] ss:$8 sps:$4 sm:$0xff]  }
 0x322   : > { %v1755_v53 = vadd.f32 %v1750_v46, %v1733_v49  ;;  %v1734_v54 = vadd.f32 %v1728_v52, %v1479_v48  ;;  %v4460_v46 = vld [vmem:[%s5681_s3 + $0x110] ss:$8 sps:$4 sm:$0xff]   ;;  %v4468_v48 = vld [vmem:[%s5681_s3 + $0x104] ss:$8 sps:$4 sm:$0xff]   ;;  %v4474_v52 = vld [vmem:[%s5681_s3 + $0x1f4] ss:$8 sps:$4 sm:$0xff]  }
 0x323   : > { %v1730_v57 = vpop.f32.mrf.mxu1  ;;  %v4471_v49 = vld [vmem:[%s5681_s3 + $0x4] ss:$8 sps:$4 sm:$0xff]  }
 0x324   : > { %v1757_v58 = vmul.f32 0.2, %v1755_v53  ;;  %v1756_v60 = vadd.f32 %v1754_v51, %v1734_v54  ;;  %v4469_v51 = vld [vmem:[%s5681_s3] ss:$8 sps:$4 sm:$0xff]   ;;  %v4472_v54 = vld [vmem:[%s5681_s3 + $0x1f0] ss:$8 sps:$4 sm:$0xff]  }
 0x325   : > { %v1731_v62 = vpop.f32.mrf.mxu1  ;;  %v4483_v57 = vld [vmem:[%s5681_s3 + $0xe4] ss:$8 sps:$4 sm:$0xff]  }
 0x326   : > { %v1759_v63 = vmax.f32 %v1755_v53, %v1757_v58  ;;  %v1758_v0 = vmul.f32 0.2, %v1756_v60  ;;  %v4477_v53 = vld [vmem:[%s5681_s3 + $0xf4] ss:$8 sps:$4 sm:$0xff]   ;;  %v4478_v58 = vld [vmem:[%s5681_s3 + $0x1e0] ss:$8 sps:$4 sm:$0xff]  }
 0x327   : > { %v4484_v62 = vld [vmem:[%s5681_s3 + $0x1d0] ss:$8 sps:$4 sm:$0xff]  }
 0x328   : > { %v1779_v4 = vmul.f32 %v1774_v59, %v1759_v63  ;;  %v1760_v5 = vmax.f32 %v1756_v60, %v1758_v0  ;;  %v4481_v59 = vld [vmem:[%s5681_s3 + $0xe0] ss:$8 sps:$4 sm:$0xff]   ;;  %v4486_v60 = vld [vmem:[%s5681_s3 + $0x1d4] ss:$8 sps:$4 sm:$0xff]   ;;  %v4487_v63 = vld [vmem:[%s5681_s3 + $0xd0] ss:$8 sps:$4 sm:$0xff]  }
 0x329   : > { %v4492_v0 = vld [vmem:[%s5681_s3 + $0x1c4] ss:$8 sps:$4 sm:$0xff]  }
 0x32a   : > { %v1780_v7 = vmul.f32 %v1778_v2, %v1760_v5  ;;  %v1799_v8 = vadd.f32 %v1794_v3, %v1779_v4  ;;  %v4490_v2 = vld [vmem:[%s5681_s3 + $0x1c0] ss:$8 sps:$4 sm:$0xff]   ;;  %v4495_v3 = vld [vmem:[%s5681_s3 + $0xc4] ss:$8 sps:$4 sm:$0xff]   ;;  %v4498_v5 = vld [vmem:[%s5681_s3 + $0x1b4] ss:$8 sps:$4 sm:$0xff]  }
 0x32b   : > { %v4493_v4 = vld [vmem:[%s5681_s3 + $0xc0] ss:$8 sps:$4 sm:$0xff]  }
 0x32c   : > { %v1800_v9 = vadd.f32 %v1798_v6, %v1780_v7  ;;  %v1801_v10 = vpack.c.bf16 %v1799_v8, %v1799_v8  ;;  %v4496_v6 = vld [vmem:[%s5681_s3 + $0x1b0] ss:$8 sps:$4 sm:$0xff]   ;;  %v4501_v7 = vld [vmem:[%s5681_s3 + $0xb4] ss:$8 sps:$4 sm:$0xff]  }
 0x32d   : > { %v4499_v8 = vld [vmem:[%s5681_s3 + $0xb0] ss:$8 sps:$4 sm:$0xff]  }
 0x32e   : > { %v1802_v11 = vpack.c.bf16 %v1800_v9, %v1800_v9  ;;  %v1808_v18 = vsel %vm1806_vm4, %v1801_v10, 0  ;;  %v4502_v9 = vld [vmem:[%s5681_s3 + $0x1a0] ss:$8 sps:$4 sm:$0xff]   ;;  %v4504_v10 = vld [vmem:[%s5681_s3 + $0x1a4] ss:$8 sps:$4 sm:$0xff]  }
 0x330   : > { %3930 = vmatprep.subr.msk.bf16.mxu1 %vm1806_vm4, %v1802_v11  ;;  %3932 = vmatprep.subr.msk.bf16.mxu0 %vm1806_vm4, %v1802_v11  ;;  %v4505_v11 = vld [vmem:[%s5681_s3 + $0xa0] ss:$8 sps:$4 sm:$0xff]  }
 0x331   : > { %1828 = vmatpush1.bf16.msra.mxu1 %v1808_v18  ;;  %1879 = vmatpush1.bf16.msra.mxu0 %v1808_v18  ;;  %v4513_v18 = vld [vmem:[%s5681_s3 + $0x94] ss:$8 sps:$4 sm:$0xff]  }
 0x332   : > { %2172 = vmatprep.subr.bf16.mxu0 %v4426_v13  ;;  %2373 = vmatprep.subr.bf16.mxu1 %v4429_v14  ;;  %v4507_v13 = vld [vmem:[%s5681_s3 + $0xa4] ss:$8 sps:$4 sm:$0xff]   ;;  %v4510_v14 = vld [vmem:[%s5681_s3 + $0x194] ss:$8 sps:$4 sm:$0xff]  }
 0x334   : > { %3933 = vmatmul.mubr.msk.bf16.vlgmr.msra.gmra.mxu0 %vm1803_vm5, %v5113_v21  ;;  %3931 = vmatmul.mubr.msk.bf16.vlgmr.msra.gmra.mxu1 %vm1803_vm5, %v5105_v16  ;;  %v4441_v16 = vld [vmem:[%s5681_s3 + $0x54] ss:$8 sps:$4 sm:$0xff]   ;;  %v4436_v21 = vld [vmem:[%s5681_s3 + $0x150] ss:$8 sps:$4 sm:$0xff]  }
 0x335   : > { %2173 = vmatpush1.bf16.msra.mxu0 %v4424_v20  ;;  %2374 = vmatpush1.bf16.msra.mxu1 %v4427_v22  ;;  %v4508_v20 = vld [vmem:[%s5681_s3 + $0x190] ss:$8 sps:$4 sm:$0xff]  }
 0x336   : > { %2174 = vmatprep.subr.bf16.mxu0 %v4432_v23  ;;  %2375 = vmatprep.subr.bf16.mxu1 %v4435_v24  ;;  %v4511_v22 = vld [vmem:[%s5681_s3 + $0x90] ss:$8 sps:$4 sm:$0xff]   ;;  %v4516_v23 = vld [vmem:[%s5681_s3 + $0x184] ss:$8 sps:$4 sm:$0xff]  }
 0x337   : > { %v4519_v24 = vld [vmem:[%s5681_s3 + $0x84] ss:$8 sps:$4 sm:$0xff]  }
 0x339   : > { %2175 = vmatpush1.bf16.msra.mxu0 %v4430_v47  ;;  %2376 = vmatpush1.bf16.msra.mxu1 %v4433_v25  ;;  %v4514_v47 = vld [vmem:[%s5681_s3 + $0x180] ss:$8 sps:$4 sm:$0xff]  }
 0x33a   : > { %2176 = vmatprep.subr.bf16.mxu0 %v4438_v26  ;;  %2377 = vmatprep.subr.bf16.mxu1 %v4441_v16  ;;  %v4517_v25 = vld [vmem:[%s5681_s3 + $0x80] ss:$8 sps:$4 sm:$0xff]   ;;  %v4522_v26 = vld [vmem:[%s5681_s3 + $0x274] ss:$8 sps:$4 sm:$0xff]  }
 0x33d   : > { %2177 = vmatpush1.bf16.msra.mxu0 %v4436_v21  ;;  %2378 = vmatpush1.bf16.msra.mxu1 %v4439_v28 }
 0x33e   : > { %2178 = vmatprep.subr.bf16.mxu0 %v4444_v29  ;;  %2379 = vmatprep.subr.bf16.mxu1 %v4447_v30 }
 0x341   : > { %2179 = vmatpush1.bf16.msra.mxu0 %v4442_v31  ;;  %2380 = vmatpush1.bf16.msra.mxu1 %v4445_v33 }
 0x342   : > { %2180 = vmatprep.subr.bf16.mxu0 %v4450_v34  ;;  %2381 = vmatprep.subr.bf16.mxu1 %v4453_v35 }
 0x345   : > { %2181 = vmatpush1.bf16.msra.mxu0 %v4448_v36  ;;  %2382 = vmatpush1.bf16.msra.mxu1 %v4451_v37 }
 0x346   : > { %2182 = vmatprep.subr.bf16.mxu0 %v4456_v38  ;;  %2383 = vmatprep.subr.bf16.mxu1 %v4459_v39 }
 0x349   : > { %2183 = vmatpush1.bf16.msra.mxu0 %v4454_v40  ;;  %2384 = vmatpush1.bf16.msra.mxu1 %v4457_v42 }
 0x34a   : > { %2184 = vmatprep.subr.bf16.mxu0 %v4462_v43  ;;  %2385 = vmatprep.subr.bf16.mxu1 %v4465_v45 }
 0x34d   : > { %2185 = vmatpush1.bf16.msra.mxu0 %v4460_v46  ;;  %2386 = vmatpush1.bf16.msra.mxu1 %v4463_v1 }
 0x34e   : > { %2186 = vmatprep.subr.bf16.mxu0 %v4468_v48  ;;  %2387 = vmatprep.subr.bf16.mxu1 %v4471_v49 }
 0x351   : > { %2187 = vmatpush1.bf16.msra.mxu0 %v4466_v50  ;;  %2388 = vmatpush1.bf16.msra.mxu1 %v4469_v51 }
 0x352   : > { %2188 = vmatprep.subr.bf16.mxu0 %v4474_v52  ;;  %2389 = vmatprep.subr.bf16.mxu1 %v4477_v53 }
 0x355   : > { %2189 = vmatpush2.bf16.msra.mxu0 %v4472_v54  ;;  %2390 = vmatpush2.bf16.msra.mxu1 %v4475_v55 }
 0x356   : > { %2190 = vmatprep.subr.bf16.mxu0 %v4480_v56  ;;  %2391 = vmatprep.subr.bf16.mxu1 %v4483_v57 }
 0x359   : > { %2191 = vmatpush2.bf16.msra.mxu0 %v4478_v58  ;;  %2392 = vmatpush2.bf16.msra.mxu1 %v4481_v59 }
 0x35a   : > { %2192 = vmatprep.subr.bf16.mxu0 %v4486_v60  ;;  %2393 = vmatprep.subr.bf16.mxu1 %v4489_v61 }
 0x35d   : > { %2193 = vmatpush2.bf16.msra.mxu0 %v4484_v62  ;;  %2394 = vmatpush2.bf16.msra.mxu1 %v4487_v63 }
 0x35e   : > { %2194 = vmatprep.subr.bf16.mxu0 %v4492_v0  ;;  %2395 = vmatprep.subr.bf16.mxu1 %v4495_v3 }
 0x361   : > { %2195 = vmatpush2.bf16.msra.mxu0 %v4490_v2  ;;  %2396 = vmatpush2.bf16.msra.mxu1 %v4493_v4  ;;  %v4520_v2 = vld [vmem:[%s5681_s3 + $0x270] ss:$8 sps:$4 sm:$0xff]   ;;  %v4525_v4 = vld [vmem:[%s5681_s3 + $0x264] ss:$8 sps:$4 sm:$0xff]  }
 0x362   : > { %2196 = vmatprep.subr.bf16.mxu0 %v4498_v5  ;;  %2397 = vmatprep.subr.bf16.mxu1 %v4501_v7  ;;  %v4528_v7 = vld [vmem:[%s5681_s3 + $0x254] ss:$8 sps:$4 sm:$0xff]  }
 0x365   : > { %2197 = vmatpush2.bf16.msra.mxu0 %v4496_v6  ;;  %2398 = vmatpush2.bf16.msra.mxu1 %v4499_v8  ;;  %v4523_v6 = vld [vmem:[%s5681_s3 + $0x260] ss:$8 sps:$4 sm:$0xff]   ;;  %v4526_v8 = vld [vmem:[%s5681_s3 + $0x250] ss:$8 sps:$4 sm:$0xff]  }
 0x366   : > { %2198 = vmatprep.subr.bf16.mxu0 %v4504_v10  ;;  %2399 = vmatprep.subr.bf16.mxu1 %v4507_v13  ;;  %v4529_v10 = vld [vmem:[%s5681_s3 + $0x240] ss:$8 sps:$4 sm:$0xff]   ;;  %v4532_v13 = vld [vmem:[%s5681_s3 + $0x230] ss:$8 sps:$4 sm:$0xff]  }
 0x369   : > { %2199 = vmatpush2.bf16.msra.mxu0 %v4502_v9  ;;  %2400 = vmatpush2.bf16.msra.mxu1 %v4505_v11  ;;  %v4531_v9 = vld [vmem:[%s5681_s3 + $0x244] ss:$8 sps:$4 sm:$0xff]   ;;  %v4534_v11 = vld [vmem:[%s5681_s3 + $0x234] ss:$8 sps:$4 sm:$0xff]  }
 0x36a   : > { %2200 = vmatprep.subr.bf16.mxu0 %v4510_v14  ;;  %2401 = vmatprep.subr.bf16.mxu1 %v4513_v18  ;;  %v4537_v14 = vld [vmem:[%s5681_s3 + $0x224] ss:$8 sps:$4 sm:$0xff]   ;;  %v4535_v18 = vld [vmem:[%s5681_s3 + $0x220] ss:$8 sps:$4 sm:$0xff]  }
 0x36d   : > { %2201 = vmatpush2.bf16.msra.mxu0 %v4508_v20  ;;  %2402 = vmatpush2.bf16.msra.mxu1 %v4511_v22  ;;  %v4540_v20 = vld [vmem:[%s5681_s3 + $0x214] ss:$8 sps:$4 sm:$0xff]   ;;  %v4538_v22 = vld [vmem:[%s5681_s3 + $0x210] ss:$8 sps:$4 sm:$0xff]  }
 0x36e   : > { %2202 = vmatprep.subr.bf16.mxu0 %v4516_v23  ;;  %2403 = vmatprep.subr.bf16.mxu1 %v4519_v24  ;;  %v4543_v23 = vld [vmem:[%s5681_s3 + $0x204] ss:$8 sps:$4 sm:$0xff]   ;;  %v4541_v24 = vld [vmem:[%s5681_s3 + $0x200] ss:$8 sps:$4 sm:$0xff]  }
 0x371   : > { %2203 = vmatpush2.bf16.msra.mxu0 %v4514_v47  ;;  %2404 = vmatpush2.bf16.msra.mxu1 %v4517_v25  ;;  %v4546_v47 = vld [vmem:[%s5681_s3 + $0x2f4] ss:$8 sps:$4 sm:$0xff]   ;;  %v4544_v25 = vld [vmem:[%s5681_s3 + $0x2f0] ss:$8 sps:$4 sm:$0xff]  }
 0x372   : > { %2623 = vmatprep.subr.bf16.mxu0 %v4522_v26  ;;  %v4549_v26 = vld [vmem:[%s5681_s3 + $0x2e4] ss:$8 sps:$4 sm:$0xff]  }
 0x3f4   : > { %v1898_v16 = vpop.f32.mrf.mxu0  ;;  %v1847_v21 = vpop.f32.mrf.mxu1 }
 0x3f5   : > { %v1907_v28 = vrot.slane %v1898_v16, 3  ;;  %v1856_v29 = vrot.slane %v1847_v21, 7  ;;  %v4547_v16 = vld [vmem:[%s5681_s3 + $0x2e0] ss:$8 sps:$4 sm:$0xff]   ;;  %v4552_v21 = vld [vmem:[%s5681_s3 + $0x2d4] ss:$8 sps:$4 sm:$0xff]  }
 0x3f6   : > { %v1900_v30 = vpop.f32.mrf.mxu0  ;;  %v1849_v31 = vpop.f32.mrf.mxu1 }
 0x3f7   : > { %1911 = vst [vmem:[#allocation3 + $0x10] ss:$-12 sps:$4 sm:$0xe1] %v1907_v28   ;;  %v1908_v33 = vrot.slane %v1900_v30, 3  ;;  %1860 = vst [vmem:[#allocation3] sm:$0x1e] %v1856_v29 }
 0x3f8   : > { %v1857_v34 = vrot.slane %v1849_v31, 7  ;;  %v1902_v35 = vpop.f32.mrf.mxu0  ;;  %v1851_v36 = vpop.f32.mrf.mxu1  ;;  %v4550_v28 = vld [vmem:[%s5681_s3 + $0x2d0] ss:$8 sps:$4 sm:$0xff]   ;;  %v4555_v29 = vld [vmem:[%s5681_s3 + $0x2c4] ss:$8 sps:$4 sm:$0xff]  }
 0x3f9   : > { %1912 = vst [vmem:[#allocation3 + $0x18] ss:$-12 sps:$4 sm:$0xe1] %v1908_v33   ;;  %v4553_v30 = vld [vmem:[%s5681_s3 + $0x2c0] ss:$8 sps:$4 sm:$0xff]  }
 0x3fa   : > { %1861 = vst [vmem:[#allocation3 + $0x8] sm:$0x1e] %v1857_v34  ;;  %v1903_v37 = vpop.f32.mrf.mxu0  ;;  %v1852_v38 = vpop.f32.mrf.mxu1  ;;  %v4558_v31 = vld [vmem:[%s5681_s3 + $0x2b4] ss:$8 sps:$4 sm:$0xff]   ;;  %v4556_v33 = vld [vmem:[%s5681_s3 + $0x2b0] ss:$8 sps:$4 sm:$0xff]  }
 0x3fb   : > { %v4561_v34 = vld [vmem:[%s5681_s3 + $0x2a4] ss:$8 sps:$4 sm:$0xff]   ;;  %v4559_v36 = vld [vmem:[%s5681_s3 + $0x2a0] ss:$8 sps:$4 sm:$0xff]   ;;  %v4564_v37 = vld [vmem:[%s5681_s3 + $0x294] ss:$8 sps:$4 sm:$0xff]  }
 0x3fe   : > { %v1919_v39 = vld [vmem:[#allocation3] sm:$0xe0]  ;;  %v1921_v40 = vld [vmem:[#allocation3 + $0x10] sm:$0x1]  ;;  %v1915_v42 = vld [vmem:[#allocation3] sm:$0xf] }
 0x3ff   : > { %v1923_v43 = vpack.c.bf16 %v1921_v40, %v1919_v39  ;;  %v1917_v48 = vpack.c.bf16 %v1915_v42, %v1915_v42  ;;  %v1925_v35 = vld [vmem:[#allocation3] sm:$0x1e]  ;;  %v4567_v40 = vld [vmem:[%s5681_s3 + $0x284] ss:$8 sps:$4 sm:$0xff]  }
 0x400   : > { %v1920_v45 = vld [vmem:[#allocation3 + $0x8] sm:$0xe0]  ;;  %v1922_v46 = vld [vmem:[#allocation3 + $0x18] sm:$0x1]  ;;  %v1927_v38 = vpack.c.bf16 %v1925_v35, %v1925_v35  ;;  %v4562_v39 = vld [vmem:[%s5681_s3 + $0x290] ss:$8 sps:$4 sm:$0xff]  }
 0x401   : > { %v1916_v1 = vld [vmem:[#allocation3 + $0x8] sm:$0xf]  ;;  %v1924_v49 = vpack.c.bf16 %v1922_v46, %v1920_v45  ;;  %v1995_v51 = vshrl.u32 %v1923_v43, 16  ;;  %v1998_v52 = vshll.u32 %v1923_v43, 16  ;;  %v4565_v43 = vld [vmem:[%s5681_s3 + $0x280] ss:$8 sps:$4 sm:$0xff]  }
 0x402   : > { %v1918_v50 = vpack.c.bf16 %v1916_v1, %v1916_v1  ;;  %v1926_v53 = vld [vmem:[#allocation3 + $0x8] sm:$0x1e]  ;;  %v2450_v42 = vshll.u32 %v1927_v38, 16  ;;  %v2448_v45 = vshrl.u32 %v1927_v38, 16  ;;  %v4642_v38 = vld [vmem:[#allocation6 + $0x1c4] ss:$8 sps:$4 sm:$0xff]  }
 0x403   : > { %v1928_v54 = vpack.c.bf16 %v1926_v53, %v1926_v53  ;;  %v2003_v55 = vshrl.u32 %v1924_v49, 16  ;;  %v2006_v56 = vshll.u32 %v1924_v49, 16  ;;  %v1997_v57 = vrot.slane %v1995_v51, 2  ;;  %v4570_v49 = vld [vmem:[#allocation6 + $0x74] ss:$8 sps:$4 sm:$0xff]  }
 0x404   : > { %2405 = vmatprep.mubr.bf16.mxu1 %v1918_v50  ;;  %v2000_v58 = vrot.slane %v1998_v52, 3  ;;  %v2452_v46 = vrot.slane %v2450_v42, 1  ;;  %v4573_v50 = vld [vmem:[#allocation6 + $0x64] ss:$8 sps:$4 sm:$0xff]   ;;  %v4574_v51 = vld [vmem:[#allocation6 + $0x170] ss:$8 sps:$4 sm:$0xff]  }
 0x405   : > { %2406 = vmatmul.mubr.bf16.vlgmr.msra.gmra.mxu1 %v1917_v48  ;;  %v2455_v59 = vshrl.u32 %v1928_v54, 16  ;;  %v2457_v60 = vshll.u32 %v1928_v54, 16  ;;  %v2005_v61 = vrot.slane %v2003_v55, 2  ;;  %v2008_v62 = vrot.slane %v2006_v56, 3  ;;  %v4568_v48 = vld [vmem:[#allocation6 + $0x70] ss:$8 sps:$4 sm:$0xff]  }
 0x406   : > { %v2001_v3 = vor.u32 %v2000_v58, %v1997_v57  ;;  %v2453_v1 = vor.u32 %v2452_v46, %v2448_v45  ;;  %v4576_v52 = vld [vmem:[#allocation6 + $0x174] ss:$8 sps:$4 sm:$0xff]   ;;  %v4571_v53 = vld [vmem:[#allocation6 + $0x60] ss:$8 sps:$4 sm:$0xff]   ;;  %v4582_v54 = vld [vmem:[#allocation6 + $0x164] ss:$8 sps:$4 sm:$0xff]  }
 0x407   : > { %v2459_v63 = vrot.slane %v2457_v60, 1  ;;  %v2009_v0 = vor.u32 %v2008_v62, %v2005_v61  ;;  %3034 = vmatprep.subr.bf16.mxu1 %v4576_v52  ;;  %v4579_v55 = vld [vmem:[#allocation6 + $0x54] ss:$8 sps:$4 sm:$0xff]   ;;  %v4580_v56 = vld [vmem:[#allocation6 + $0x160] ss:$8 sps:$4 sm:$0xff]  }
 0x408   : > { %3035 = vmatpush1.bf16.msra.mxu1 %v4574_v51  ;;  %v4588_v57 = vld [vmem:[#allocation6 + $0x154] ss:$8 sps:$4 sm:$0xff]   ;;  %v4577_v58 = vld [vmem:[#allocation6 + $0x50] ss:$8 sps:$4 sm:$0xff]   ;;  %v4594_v61 = vld [vmem:[#allocation6 + $0x144] ss:$8 sps:$4 sm:$0xff]  }
 0x409   : > { %v2460_v5 = vor.u32 %v2459_v63, %v2455_v59  ;;  %2204 = vmatprep.mubr.bf16.mxu0 %v2009_v0  ;;  %3036 = vmatprep.subr.bf16.mxu1 %v4582_v54  ;;  %v4585_v59 = vld [vmem:[#allocation6 + $0x44] ss:$8 sps:$4 sm:$0xff]   ;;  %v4586_v60 = vld [vmem:[#allocation6 + $0x150] ss:$8 sps:$4 sm:$0xff]   ;;  %v4583_v62 = vld [vmem:[#allocation6 + $0x40] ss:$8 sps:$4 sm:$0xff]  }
 0x40a   : > { %2205 = vmatmul.mubr.bf16.vlgmr.msra.gmra.mxu0 %v2001_v3  ;;  %v4591_v63 = vld [vmem:[#allocation6 + $0x34] ss:$8 sps:$4 sm:$0xff]   ;;  %v4592_v0 = vld [vmem:[#allocation6 + $0x140] ss:$8 sps:$4 sm:$0xff]   ;;  %v4589_v3 = vld [vmem:[#allocation6 + $0x30] ss:$8 sps:$4 sm:$0xff]  }
 0x40b   : > { %2624 = vmatpush1.bf16.msra.mxu0 %v4520_v2  ;;  %2655 = vmatprep.mubr.bf16.mxu0 %v2460_v5  ;;  %v4600_v2 = vld [vmem:[#allocation6 + $0x134] ss:$8 sps:$4 sm:$0xff]   ;;  %v4598_v5 = vld [vmem:[#allocation6 + $0x130] ss:$8 sps:$4 sm:$0xff]   ;;  %v4643_v42 = vld [vmem:[#allocation6 + $0xa0] ss:$8 sps:$4 sm:$0xff]  }
 0x40c   : > { %2625 = vmatprep.subr.bf16.mxu0 %v4525_v4  ;;  %3037 = vmatpush1.bf16.msra.mxu1 %v4580_v56  ;;  %v4597_v4 = vld [vmem:[#allocation6 + $0x24] ss:$8 sps:$4 sm:$0xff]   ;;  %v4634_v35 = vld [vmem:[#allocation6 + $0x1d0] ss:$8 sps:$4 sm:$0xff]   ;;  %v4651_v46 = vld [vmem:[#allocation6 + $0x94] ss:$8 sps:$4 sm:$0xff]  }
 0x40d   : > { %3038 = vmatprep.subr.bf16.mxu1 %v4588_v57  ;;  %v4646_v45 = vld [vmem:[#allocation6 + $0x1b0] ss:$8 sps:$4 sm:$0xff]   ;;  %v4655_v51 = vld [vmem:[#allocation6 + $0x80] ss:$8 sps:$4 sm:$0xff]   ;;  %v4660_v52 = vld [vmem:[#allocation6 + $0x194] ss:$8 sps:$4 sm:$0xff]  }
 0x40e   : > { %v4663_v54 = vld [vmem:[#allocation6 + $0x184] ss:$8 sps:$4 sm:$0xff]   ;;  %v4666_v56 = vld [vmem:[#allocation6 + $0x274] ss:$8 sps:$4 sm:$0xff]  }
 0x40f   : > { %2626 = vmatpush1.bf16.msra.mxu0 %v4523_v6  ;;  %v4606_v6 = vld [vmem:[#allocation6 + $0x124] ss:$8 sps:$4 sm:$0xff]  }
 0x410   : > { %2627 = vmatprep.subr.bf16.mxu0 %v4528_v7  ;;  %3039 = vmatpush1.bf16.msra.mxu1 %v4586_v60  ;;  %v4595_v7 = vld [vmem:[#allocation6 + $0x20] ss:$8 sps:$4 sm:$0xff]  }
 0x411   : > { %3040 = vmatprep.subr.bf16.mxu1 %v4594_v61 }
 0x413   : > { %2628 = vmatpush1.bf16.msra.mxu0 %v4526_v8  ;;  %v4603_v8 = vld [vmem:[#allocation6 + $0x14] ss:$8 sps:$4 sm:$0xff]  }
 0x414   : > { %2629 = vmatprep.subr.bf16.mxu0 %v4531_v9  ;;  %3041 = vmatpush1.bf16.msra.mxu1 %v4592_v0  ;;  %v4604_v9 = vld [vmem:[#allocation6 + $0x120] ss:$8 sps:$4 sm:$0xff]  }
 0x415   : > { %3042 = vmatprep.subr.bf16.mxu1 %v4600_v2 }
 0x417   : > { %2630 = vmatpush1.bf16.msra.mxu0 %v4529_v10  ;;  %v4612_v10 = vld [vmem:[#allocation6 + $0x114] ss:$8 sps:$4 sm:$0xff]  }
 0x418   : > { %2631 = vmatprep.subr.bf16.mxu0 %v4534_v11  ;;  %3043 = vmatpush1.bf16.msra.mxu1 %v4598_v5  ;;  %v4601_v11 = vld [vmem:[#allocation6 + $0x10] ss:$8 sps:$4 sm:$0xff]  }
 0x419   : > { %3044 = vmatprep.subr.bf16.mxu1 %v4606_v6 }
 0x41b   : > { %2632 = vmatpush1.bf16.msra.mxu0 %v4532_v13  ;;  %v4609_v13 = vld [vmem:[#allocation6 + $0x4] ss:$8 sps:$4 sm:$0xff]  }
 0x41c   : > { %2633 = vmatprep.subr.bf16.mxu0 %v4537_v14  ;;  %3045 = vmatpush1.bf16.msra.mxu1 %v4604_v9  ;;  %v4610_v14 = vld [vmem:[#allocation6 + $0x110] ss:$8 sps:$4 sm:$0xff]  }
 0x41d   : > { %3046 = vmatprep.subr.bf16.mxu1 %v4612_v10 }
 0x41f   : > { %2634 = vmatpush1.bf16.msra.mxu0 %v4535_v18  ;;  %v4607_v18 = vld [vmem:[#allocation6] ss:$8 sps:$4 sm:$0xff]  }
 0x420   : > { %2635 = vmatprep.subr.bf16.mxu0 %v4540_v20  ;;  %3047 = vmatpush1.bf16.msra.mxu1 %v4610_v14  ;;  %v4615_v20 = vld [vmem:[#allocation6 + $0xf4] ss:$8 sps:$4 sm:$0xff]  }
 0x423   : > { %2636 = vmatpush1.bf16.msra.mxu0 %v4538_v22  ;;  %v4613_v22 = vld [vmem:[#allocation6 + $0xf0] ss:$8 sps:$4 sm:$0xff]  }
 0x424   : > { %2637 = vmatprep.subr.bf16.mxu0 %v4543_v23  ;;  %v4618_v23 = vld [vmem:[#allocation6 + $0x104] ss:$8 sps:$4 sm:$0xff]  }
 0x425   : > { %3048 = vmatprep.subr.bf16.mxu1 %v4618_v23 }
 0x427   : > { %2638 = vmatpush1.bf16.msra.mxu0 %v4541_v24  ;;  %v4616_v24 = vld [vmem:[#allocation6 + $0x100] ss:$8 sps:$4 sm:$0xff]  }
 0x428   : > { %2639 = vmatprep.subr.bf16.mxu0 %v4546_v47  ;;  %3049 = vmatpush1.bf16.msra.mxu1 %v4616_v24  ;;  %v4621_v47 = vld [vmem:[#allocation6 + $0xe4] ss:$8 sps:$4 sm:$0xff]  }
 0x42b   : > { %2640 = vmatpush2.bf16.msra.mxu0 %v4544_v25  ;;  %v4619_v25 = vld [vmem:[#allocation6 + $0xe0] ss:$8 sps:$4 sm:$0xff]  }
 0x42c   : > { %2641 = vmatprep.subr.bf16.mxu0 %v4549_v26  ;;  %v4624_v26 = vld [vmem:[#allocation6 + $0x1f4] ss:$8 sps:$4 sm:$0xff]  }
 0x42d   : > { %3050 = vmatprep.subr.bf16.mxu1 %v4624_v26 }
 0x42f   : > { %2642 = vmatpush2.bf16.msra.mxu0 %v4547_v16  ;;  %v4622_v16 = vld [vmem:[#allocation6 + $0x1f0] ss:$8 sps:$4 sm:$0xff]  }
 0x430   : > { %2643 = vmatprep.subr.bf16.mxu0 %v4552_v21  ;;  %3051 = vmatpush2.bf16.msra.mxu1 %v4622_v16  ;;  %v4627_v21 = vld [vmem:[#allocation6 + $0xd4] ss:$8 sps:$4 sm:$0xff]   ;;  %v4759_v16 = vmov 1966171168  }
 0x433   : > { %2644 = vmatpush2.bf16.msra.mxu0 %v4550_v28  ;;  %v4625_v28 = vld [vmem:[#allocation6 + $0xd0] ss:$8 sps:$4 sm:$0xff]  }
 0x434   : > { %2645 = vmatprep.subr.bf16.mxu0 %v4555_v29  ;;  %v4630_v29 = vld [vmem:[#allocation6 + $0x1e4] ss:$8 sps:$4 sm:$0xff]  }
 0x435   : > { %3052 = vmatprep.subr.bf16.mxu1 %v4630_v29 }
 0x437   : > { %2646 = vmatpush2.bf16.msra.mxu0 %v4553_v30  ;;  %v4628_v30 = vld [vmem:[#allocation6 + $0x1e0] ss:$8 sps:$4 sm:$0xff]  }
 0x438   : > { %2647 = vmatprep.subr.bf16.mxu0 %v4558_v31  ;;  %3053 = vmatpush2.bf16.msra.mxu1 %v4628_v30  ;;  %v4633_v31 = vld [vmem:[#allocation6 + $0xc4] ss:$8 sps:$4 sm:$0xff]  }
 0x43b   : > { %2648 = vmatpush2.bf16.msra.mxu0 %v4556_v33  ;;  %v4631_v33 = vld [vmem:[#allocation6 + $0xc0] ss:$8 sps:$4 sm:$0xff]  }
 0x43c   : > { %2649 = vmatprep.subr.bf16.mxu0 %v4561_v34  ;;  %v4636_v34 = vld [vmem:[#allocation6 + $0x1d4] ss:$8 sps:$4 sm:$0xff]  }
 0x43d   : > { %3054 = vmatprep.subr.bf16.mxu1 %v4636_v34 }
 0x43e   : > { %3055 = vmatpush2.bf16.msra.mxu1 %v4634_v35 }
 0x43f   : > { %2650 = vmatpush2.bf16.msra.mxu0 %v4559_v36  ;;  %v4639_v36 = vld [vmem:[#allocation6 + $0xb4] ss:$8 sps:$4 sm:$0xff]   ;;  %3056 = vmatprep.subr.bf16.mxu1 %v4642_v38 }
 0x440   : > { %2651 = vmatprep.subr.bf16.mxu0 %v4564_v37  ;;  %v4637_v37 = vld [vmem:[#allocation6 + $0xb0] ss:$8 sps:$4 sm:$0xff]  }
 0x443   : > { %2652 = vmatpush2.bf16.msra.mxu0 %v4562_v39  ;;  %v4640_v39 = vld [vmem:[#allocation6 + $0x1c0] ss:$8 sps:$4 sm:$0xff]  }
 0x444   : > { %2653 = vmatprep.subr.bf16.mxu0 %v4567_v40  ;;  %3057 = vmatpush2.bf16.msra.mxu1 %v4640_v39  ;;  %v4645_v40 = vld [vmem:[#allocation6 + $0xa4] ss:$8 sps:$4 sm:$0xff]  }
 0x447   : > { %2654 = vmatpush2.bf16.msra.mxu0 %v4565_v43  ;;  %v4648_v43 = vld [vmem:[#allocation6 + $0x1b4] ss:$8 sps:$4 sm:$0xff]  }
 0x448   : > { %3235 = vmatprep.subr.bf16.mxu0 %v4570_v49  ;;  %3058 = vmatprep.subr.bf16.mxu1 %v4648_v43  ;;  %v4654_v49 = vld [vmem:[#allocation6 + $0x1a4] ss:$8 sps:$4 sm:$0xff]  }
 0x449   : > { %3059 = vmatpush2.bf16.msra.mxu1 %v4646_v45 }
 0x44a   : > { %2656 = vmatmul.mubr.bf16.vlgmr.msra.gmra.mxu0 %v2453_v1  ;;  %v4649_v1 = vld [vmem:[#allocation6 + $0x90] ss:$8 sps:$4 sm:$0xff]   ;;  %3060 = vmatprep.subr.bf16.mxu1 %v4654_v49 }
 0x44b   : > { %3236 = vmatpush1.bf16.msra.mxu0 %v4568_v48  ;;  %v4652_v48 = vld [vmem:[#allocation6 + $0x1a0] ss:$8 sps:$4 sm:$0xff]  }
 0x44c   : > { %3237 = vmatprep.subr.bf16.mxu0 %v4573_v50  ;;  %v4657_v50 = vld [vmem:[#allocation6 + $0x84] ss:$8 sps:$4 sm:$0xff]  }
 0x44d   : > { %3061 = vmatpush2.bf16.msra.mxu1 %v4652_v48 }
 0x44e   : > { %3062 = vmatprep.subr.bf16.mxu1 %v4660_v52 }
 0x44f   : > { %3238 = vmatpush1.bf16.msra.mxu0 %v4571_v53  ;;  %v4658_v53 = vld [vmem:[#allocation6 + $0x190] ss:$8 sps:$4 sm:$0xff]  }
 0x450   : > { %3239 = vmatprep.subr.bf16.mxu0 %v4579_v55  ;;  %v4661_v55 = vld [vmem:[#allocation6 + $0x180] ss:$8 sps:$4 sm:$0xff]  }
 0x451   : > { %3063 = vmatpush2.bf16.msra.mxu1 %v4658_v53 }
 0x452   : > { %3064 = vmatprep.subr.bf16.mxu1 %v4663_v54 }
 0x453   : > { %3240 = vmatpush1.bf16.msra.mxu0 %v4577_v58 }
 0x454   : > { %3241 = vmatprep.subr.bf16.mxu0 %v4585_v59 }
 0x455   : > { %3065 = vmatpush2.bf16.msra.mxu1 %v4661_v55 }
 0x456   : > { %3485 = vmatprep.subr.bf16.mxu1 %v4666_v56 }
 0x457   : > { %3242 = vmatpush1.bf16.msra.mxu0 %v4583_v62 }
 0x458   : > { %3243 = vmatprep.subr.bf16.mxu0 %v4591_v63 }
 0x45b   : > { %3244 = vmatpush1.bf16.msra.mxu0 %v4589_v3  ;;  %v2666_v3 = vld [vmem:[%s5685_s7] sm:$0x77] }
 0x45c   : > { %3245 = vmatprep.subr.bf16.mxu0 %v4597_v4  ;;  %v2671_v4 = vrot.slane %v2666_v3, %v5070_v17  ;;  %v2675_v5 = vrot.slane %v2666_v3, %v5076_v19  ;;  %v2715_v23 = vrot.slane %v2666_v3, %v5093_v44  ;;  %v2719_v26 = vrot.slane %v2666_v3, %v5090_v41 }
 0x45e   : > { %v2681_v6 = vrot.slane %v2671_v4, %v5070_v17 }
 0x45f   : > { %3246 = vmatpush1.bf16.msra.mxu0 %v4595_v7 }
 0x460   : > { %3247 = vmatprep.subr.bf16.mxu0 %v4603_v8  ;;  %v2695_v8 = vrot.slane %v2666_v3, %v5086_v32 }
 0x463   : > { %3248 = vmatpush1.bf16.msra.mxu0 %v4601_v11  ;;  %v2685_v11 = vrot.slane %v2675_v5, %v5070_v17 }
 0x464   : > { %3249 = vmatprep.subr.bf16.mxu0 %v4609_v13 }
 0x467   : > { %3250 = vmatpush1.bf16.msra.mxu0 %v4607_v18 }
 0x468   : > { %3251 = vmatprep.subr.bf16.mxu0 %v4615_v20  ;;  %v2699_v20 = vrot.slane %v2666_v3, %v5082_v27 }
 0x46b   : > { %3252 = vmatpush2.bf16.msra.mxu0 %v4613_v22  ;;  %v2705_v22 = vrot.slane %v2695_v8, %v5086_v32 }
 0x46c   : > { %3253 = vmatprep.subr.bf16.mxu0 %v4621_v47 }
 0x46f   : > { %3254 = vmatpush2.bf16.msra.mxu0 %v4619_v25 }
 0x470   : > { %3255 = vmatprep.subr.bf16.mxu0 %v4627_v21  ;;  %v2736_v21 = vunpack.c.l.s4 %v4759_v16  ;;  %v4682_v16 = vld [vmem:[#allocation6 + $0x210] ss:$8 sps:$4 sm:$0xff]  }
 0x473   : > { %3256 = vmatpush2.bf16.msra.mxu0 %v4625_v28 }
 0x474   : > { %3257 = vmatprep.subr.bf16.mxu0 %v4633_v31  ;;  %v2709_v31 = vrot.slane %v2699_v20, %v5086_v32  ;;  %v4675_v20 = vld [vmem:[#allocation6 + $0x244] ss:$8 sps:$4 sm:$0xff]  }
 0x477   : > { %3258 = vmatpush2.bf16.msra.mxu0 %v4631_v33  ;;  %v2725_v33 = vrot.slane %v2715_v23, %v5093_v44  ;;  %v4678_v23 = vld [vmem:[#allocation6 + $0x234] ss:$8 sps:$4 sm:$0xff]  }
 0x478   : > { %3259 = vmatprep.subr.bf16.mxu0 %v4639_v36  ;;  %v2729_v36 = vrot.slane %v2719_v26, %v5093_v44  ;;  %v4684_v26 = vld [vmem:[#allocation6 + $0x214] ss:$8 sps:$4 sm:$0xff]  }
 0x47b   : > { %3260 = vmatpush2.bf16.msra.mxu0 %v4637_v37  ;;  %v2737_v37 = vunpack.c.0.s8 %v2736_v21  ;;  %v4687_v21 = vld [vmem:[#allocation6 + $0x204] ss:$8 sps:$4 sm:$0xff]  }
 0x47c   : > { %3261 = vmatprep.subr.bf16.mxu0 %v4645_v40 }
 0x47f   : > { %3262 = vmatpush2.bf16.msra.mxu0 %v4643_v42  ;;  %v2740_v42 = vsub.s32 %v2737_v37, %v5067_v15  ;;  %v4697_v37 = vld [vmem:[#allocation6 + $0x2c0] ss:$8 sps:$4 sm:$0xff]  }
 0x480   : > { %3263 = vmatprep.subr.bf16.mxu0 %v4651_v46 }
 0x483   : > { %3264 = vmatpush2.bf16.msra.mxu0 %v4649_v1 }
 0x484   : > { %3265 = vmatprep.subr.bf16.mxu0 %v4657_v50 }
 0x487   : > { %3266 = vmatpush2.bf16.msra.mxu0 %v4655_v51 }
 0x4c5   : > { %v2407_v57 = vpop.f32.mrf.mxu1 }
 0x4c7   : > { %v2409_v58 = vpop.f32.mrf.mxu1 }
 0x4c9   : > { %v2411_v59 = vpop.f32.mrf.mxu1 }
 0x4ca   : > { %v2206_v60 = vpop.f32.mrf.mxu0 }
 0x4cb   : > { %v2412_v61 = vpop.f32.mrf.mxu1  ;;  %v2408_v62 = vadd.f32 %v2407_v57, %v2206_v60 }
 0x4cc   : > { %v2208_v63 = vpop.f32.mrf.mxu0 }
 0x4cd   : > { %v2410_v9 = vadd.f32 %v2409_v58, %v2208_v63 }
 0x4ce   : > { %v2210_v0 = vpop.f32.mrf.mxu0 }
 0x4d0   : > { %v2211_v2 = vpop.f32.mrf.mxu0 }
 0x50a   : > { %v2657_v7 = vpop.f32.mrf.mxu0 }
 0x50b   : > { %v2664_v10 = vadd.f32 %v2657_v7, %v2408_v62 }
 0x50c   : > { %v2659_v13 = vpop.f32.mrf.mxu0 }
 0x50d   : > { %v2686_v14 = vadd.f32 %v2681_v6, %v2664_v10  ;;  %v2665_v18 = vadd.f32 %v2659_v13, %v2410_v9  ;;  %v4664_v6 = vld [vmem:[#allocation6 + $0x270] ss:$8 sps:$4 sm:$0xff]   ;;  %v4669_v10 = vld [vmem:[#allocation6 + $0x264] ss:$8 sps:$4 sm:$0xff]   ;;  %v4667_v13 = vld [vmem:[#allocation6 + $0x260] ss:$8 sps:$4 sm:$0xff]  }
 0x50e   : > { %v2661_v24 = vpop.f32.mrf.mxu0 }
 0x50f   : > { %v2688_v47 = vmul.f32 0.2, %v2686_v14  ;;  %v2687_v25 = vadd.f32 %v2685_v11, %v2665_v18  ;;  %v4670_v18 = vld [vmem:[#allocation6 + $0x250] ss:$8 sps:$4 sm:$0xff]  }
 0x510   : > { %v2662_v28 = vpop.f32.mrf.mxu0  ;;  %v4676_v24 = vld [vmem:[#allocation6 + $0x230] ss:$8 sps:$4 sm:$0xff]  }
 0x511   : > { %v2690_v29 = vmax.f32 %v2686_v14, %v2688_v47  ;;  %v2689_v30 = vmul.f32 0.2, %v2687_v25  ;;  %v4672_v14 = vld [vmem:[#allocation6 + $0x254] ss:$8 sps:$4 sm:$0xff]   ;;  %v4681_v47 = vld [vmem:[#allocation6 + $0x224] ss:$8 sps:$4 sm:$0xff]  }
 0x512   : > { %v4685_v28 = vld [vmem:[#allocation6 + $0x200] ss:$8 sps:$4 sm:$0xff]  }
 0x513   : > { %v2710_v34 = vmul.f32 %v2705_v22, %v2690_v29  ;;  %v2691_v35 = vmax.f32 %v2687_v25, %v2689_v30  ;;  %v4673_v22 = vld [vmem:[#allocation6 + $0x240] ss:$8 sps:$4 sm:$0xff]   ;;  %v4690_v29 = vld [vmem:[#allocation6 + $0x2f4] ss:$8 sps:$4 sm:$0xff]   ;;  %v4688_v30 = vld [vmem:[#allocation6 + $0x2f0] ss:$8 sps:$4 sm:$0xff]  }
 0x514   : > { %v4679_v25 = vld [vmem:[#allocation6 + $0x220] ss:$8 sps:$4 sm:$0xff]  }
 0x515   : > { %v2711_v38 = vmul.f32 %v2709_v31, %v2691_v35  ;;  %v2730_v39 = vadd.f32 %v2725_v33, %v2710_v34  ;;  %v4693_v31 = vld [vmem:[#allocation6 + $0x2e4] ss:$8 sps:$4 sm:$0xff]   ;;  %v4691_v33 = vld [vmem:[#allocation6 + $0x2e0] ss:$8 sps:$4 sm:$0xff]   ;;  %v4696_v34 = vld [vmem:[#allocation6 + $0x2d4] ss:$8 sps:$4 sm:$0xff]  }
 0x516   : > { %v4694_v35 = vld [vmem:[#allocation6 + $0x2d0] ss:$8 sps:$4 sm:$0xff]  }
 0x517   : > { %v2731_v40 = vadd.f32 %v2729_v36, %v2711_v38  ;;  %v4699_v36 = vld [vmem:[#allocation6 + $0x2c4] ss:$8 sps:$4 sm:$0xff]   ;;  %v4702_v38 = vld [vmem:[#allocation6 + $0x2b4] ss:$8 sps:$4 sm:$0xff]  }
 0x519   : > { %v2734_v43 = vcombine.low %v2730_v39, %v2731_v40  ;;  %v4700_v39 = vld [vmem:[#allocation6 + $0x2b0] ss:$8 sps:$4 sm:$0xff]   ;;  %v4705_v40 = vld [vmem:[#allocation6 + $0x2a4] ss:$8 sps:$4 sm:$0xff]  }
 0x51b   : > { %v2741_v45 = vrot.slane %v2734_v43, %v2740_v42  ;;  %v4703_v43 = vld [vmem:[#allocation6 + $0x2a0] ss:$8 sps:$4 sm:$0xff]  }
 0x51d   : > { %v2748_v46 = vrot.slane %v2741_v45, %v2740_v42  ;;  %v2757_v1 = vcombine.high %v2741_v45, %v2741_v45  ;;  %v4708_v45 = vld [vmem:[#allocation6 + $0x294] ss:$8 sps:$4 sm:$0xff]  }
 0x51f   : > { %2755 = vst.msk [vmem:[#allocation4 + $0x3] ss:$8 sm:$0x3] %vm2752_vm6, %v2748_v46  ;;  %v2764_v48 = vrot.slane %v2757_v1, %v2740_v42  ;;  %v2769_v49 = vcombine.high %v2748_v46, %v2748_v46  ;;  %v4706_v1 = vld [vmem:[#allocation6 + $0x290] ss:$8 sps:$4 sm:$0xff]  }
 0x521   : > { %2767 = vst.msk [vmem:[#allocation4 + $0x1] ss:$8 sm:$0x3] %vm2752_vm6, %v2764_v48  ;;  %2772 = vst.msk [vmem:[#allocation4 + $0x4] ss:$8 sm:$0x3] %vm2752_vm6, %v2769_v49  ;;  %v2774_v50 = vcombine.high %v2764_v48, %v2764_v48 }
 0x522   : > { %v4711_v48 = vld [vmem:[#allocation6 + $0x284] ss:$8 sps:$4 sm:$0xff]  }
 0x523   : > { %2777 = vst.msk [vmem:[#allocation4 + $0x2] ss:$8 sm:$0x3] %vm2752_vm6, %v2774_v50  ;;  %v4709_v50 = vld [vmem:[#allocation6 + $0x280] ss:$8 sps:$4 sm:$0xff]  }
 0x528   : > { %v2780_v51 = vld [vmem:[#allocation4 + $0x8] sm:$0x3]  ;;  %v2779_v52 = vld [vmem:[#allocation4] sm:$0x3]  ;;  %v2784_v53 = vld [vmem:[#allocation4 + $0x8] sm:$0x18] }
 0x529   : > { %v2782_v54 = vpack.c.bf16 %v2780_v51, %v2780_v51  ;;  %v2781_v55 = vpack.c.bf16 %v2779_v52, %v2779_v52  ;;  %v2786_v56 = vpack.c.bf16 %v2784_v53, %v2784_v53  ;;  %v2783_v15 = vld [vmem:[#allocation4] sm:$0x18] }
 0x52a   : > { %v2785_v57 = vpack.c.bf16 %v2783_v15, %v2783_v15  ;;  %v2788_v58 = vld [vmem:[#allocation4 + $0x8] sm:$0x6]  ;;  %v2787_v42 = vld [vmem:[#allocation4] sm:$0x6] }
 0x52b   : > { %3267 = vmatprep.mubr.bf16.mxu0 %v2782_v54  ;;  %v2865_v12 = vshrl.u32 %v2786_v56, 16  ;;  %v2868_v59 = vshll.u32 %v2786_v56, 16  ;;  %v2790_v60 = vpack.c.bf16 %v2788_v58, %v2788_v58  ;;  %v2789_v46 = vpack.c.bf16 %v2787_v42, %v2787_v42 }
 0x52c   : > { %3268 = vmatmul.mubr.bf16.vlgmr.msra.gmra.mxu0 %v2781_v55  ;;  %v2857_v61 = vshrl.u32 %v2785_v57, 16  ;;  %v2860_v62 = vshll.u32 %v2785_v57, 16 }
 0x52d   : > { %v2867_v63 = vrot.slane %v2865_v12, 1  ;;  %v2870_v0 = vrot.slane %v2868_v59, 2  ;;  %v3319_v2 = vshll.u32 %v2790_v60, 16  ;;  %v3317_v7 = vshrl.u32 %v2790_v60, 16 }
 0x52e   : > { %v2859_v3 = vrot.slane %v2857_v61, 1  ;;  %v2862_v4 = vrot.slane %v2860_v62, 2  ;;  %v3312_v49 = vshll.u32 %v2789_v46, 16  ;;  %v3310_v52 = vshrl.u32 %v2789_v46, 16  ;;  %v3528_v61 = vld [vmem:[%s5686_s8] sm:$0x77] }
 0x52f   : > { %v2871_v5 = vor.u32 %v2870_v0, %v2867_v63  ;;  %v3321_v8 = vrot.slane %v3319_v2, 1  ;;  %v3533_v62 = vrot.slane %v3528_v61, %v5070_v17  ;;  %v3537_v63 = vrot.slane %v3528_v61, %v5076_v19 }
 0x530   : > { %v2863_v9 = vor.u32 %v2862_v4, %v2859_v3  ;;  %v3314_v51 = vrot.slane %v3312_v49, 1 }
 0x531   : > { %3066 = vmatprep.mubr.bf16.mxu1 %v2871_v5  ;;  %v3322_v11 = vor.u32 %v3321_v8, %v3317_v7  ;;  %v3543_v0 = vrot.slane %v3533_v62, %v5070_v17  ;;  %v3557_v5 = vrot.slane %v3528_v61, %v5086_v32 }
 0x532   : > { %3067 = vmatmul.mubr.bf16.vlgmr.msra.gmra.mxu1 %v2863_v9  ;;  %v3315_v53 = vor.u32 %v3314_v51, %v3310_v52 }
 0x533   : > { %3486 = vmatpush1.bf16.msra.mxu1 %v4664_v6  ;;  %3517 = vmatprep.mubr.bf16.mxu1 %v3322_v11  ;;  %v3547_v6 = vrot.slane %v3537_v63, %v5070_v17  ;;  %v3577_v11 = vrot.slane %v3528_v61, %v5093_v44  ;;  %v3567_v19 = vrot.slane %v3557_v5, %v5086_v32 }
 0x534   : > { %3487 = vmatprep.subr.bf16.mxu1 %v4669_v10  ;;  %v3561_v10 = vrot.slane %v3528_v61, %v5082_v27  ;;  %v4190_v27 = vld.sshfl [vmem:[%s5687_s9] sm:$0x33 pattern:$0x76325410] }
 0x535   : > { %v3587_v17 = vrot.slane %v3577_v11, %v5093_v44 }
 0x537   : > { %3488 = vmatpush1.bf16.msra.mxu1 %v4667_v13 }
 0x538   : > { %3489 = vmatprep.subr.bf16.mxu1 %v4672_v14 }
 0x53b   : > { %3490 = vmatpush1.bf16.msra.mxu1 %v4670_v18 }
 0x53c   : > { %3491 = vmatprep.subr.bf16.mxu1 %v4675_v20  ;;  %v3581_v20 = vrot.slane %v3528_v61, %v5090_v41 }
 0x53f   : > { %3492 = vmatpush1.bf16.msra.mxu1 %v4673_v22 }
 0x540   : > { %3493 = vmatprep.subr.bf16.mxu1 %v4678_v23 }
 0x543   : > { %3494 = vmatpush1.bf16.msra.mxu1 %v4676_v24 }
 0x544   : > { %3495 = vmatprep.subr.bf16.mxu1 %v4681_v47  ;;  %v3571_v47 = vrot.slane %v3561_v10, %v5086_v32 }
 0x547   : > { %3496 = vmatpush1.bf16.msra.mxu1 %v4679_v25 }
 0x548   : > { %3497 = vmatprep.subr.bf16.mxu1 %v4684_v26 }
 0x54b   : > { %3498 = vmatpush1.bf16.msra.mxu1 %v4682_v16  ;;  %v3591_v16 = vrot.slane %v3581_v20, %v5093_v44 }
 0x54c   : > { %3499 = vmatprep.subr.bf16.mxu1 %v4687_v21 }
 0x54f   : > { %3500 = vmatpush1.bf16.msra.mxu1 %v4685_v28 }
 0x550   : > { %3501 = vmatprep.subr.bf16.mxu1 %v4690_v29  ;;  %v3603_v29 = vcombine.high %v4190_v27, %v4190_v27 }
 0x553   : > { %3502 = vmatpush2.bf16.msra.mxu1 %v4688_v30 }
 0x554   : > { %3503 = vmatprep.subr.bf16.mxu1 %v4693_v31 }
 0x557   : > { %3504 = vmatpush2.bf16.msra.mxu1 %v4691_v33 }
 0x558   : > { %3505 = vmatprep.subr.bf16.mxu1 %v4696_v34 }
 0x55b   : > { %3506 = vmatpush2.bf16.msra.mxu1 %v4694_v35 }
 0x55c   : > { %3507 = vmatprep.subr.bf16.mxu1 %v4699_v36 }
 0x55f   : > { %3508 = vmatpush2.bf16.msra.mxu1 %v4697_v37 }
 0x560   : > { %3509 = vmatprep.subr.bf16.mxu1 %v4702_v38 }
 0x563   : > { %3510 = vmatpush2.bf16.msra.mxu1 %v4700_v39 }
 0x564   : > { %3511 = vmatprep.subr.bf16.mxu1 %v4705_v40 }
 0x567   : > { %3512 = vmatpush2.bf16.msra.mxu1 %v4703_v43  ;;  %v3621_v43 = vld [vmem:[#allocation5] sm:$0x1] }
 0x568   : > { %3513 = vmatprep.subr.bf16.mxu1 %v4708_v45 }
 0x56b   : > { %3514 = vmatpush2.bf16.msra.mxu1 %v4706_v1 }
 0x56c   : > { %3515 = vmatprep.subr.bf16.mxu1 %v4711_v48 }
 0x56f   : > { %3516 = vmatpush2.bf16.msra.mxu1 %v4709_v50 }
 0x572   : > { %3518 = vmatmul.mubr.bf16.vlgmr.msra.gmra.mxu1 %v3315_v53 }
 0x5ec   : > { %v3269_v54 = vpop.f32.mrf.mxu0 }
 0x5ee   : > { %v3271_v55 = vpop.f32.mrf.mxu0 }
 0x5f0   : > { %v3273_v56 = vpop.f32.mrf.mxu0 }
 0x5f2   : > { %v3068_v15 = vpop.f32.mrf.mxu1  ;;  %v3274_v57 = vpop.f32.mrf.mxu0 }
 0x5f3   : > { %v3270_v58 = vadd.f32 %v3269_v54, %v3068_v15 }
 0x5f4   : > { %v3070_v12 = vpop.f32.mrf.mxu1 }
 0x5f5   : > { %v3272_v3 = vadd.f32 %v3271_v55, %v3070_v12 }
 0x5f6   : > { %v3072_v59 = vpop.f32.mrf.mxu1 }
 0x5f8   : > { %v3073_v60 = vpop.f32.mrf.mxu1 }
 0x632   : > { %v3519_v2 = vpop.f32.mrf.mxu1 }
 0x633   : > { %v3526_v4 = vadd.f32 %v3519_v2, %v3270_v58 }
 0x634   : > { %v3521_v7 = vpop.f32.mrf.mxu1 }
 0x635   : > { %v3548_v8 = vadd.f32 %v3543_v0, %v3526_v4  ;;  %v3527_v9 = vadd.f32 %v3521_v7, %v3272_v3 }
 0x636   : > { %v3523_v13 = vpop.f32.mrf.mxu1 }
 0x637   : > { %v3550_v14 = vmul.f32 0.2, %v3548_v8  ;;  %v3549_v18 = vadd.f32 %v3547_v6, %v3527_v9 }
 0x638   : > { %v3524_v22 = vpop.f32.mrf.mxu1 }
 0x639   : > { %v3552_v23 = vmax.f32 %v3548_v8, %v3550_v14  ;;  %v3551_v24 = vmul.f32 0.2, %v3549_v18 }
 0x63b   : > { %v3572_v25 = vmul.f32 %v3567_v19, %v3552_v23  ;;  %v3553_v26 = vmax.f32 %v3549_v18, %v3551_v24 }
 0x63d   : > { %v3573_v21 = vmul.f32 %v3571_v47, %v3553_v26  ;;  %v3592_v28 = vadd.f32 %v3587_v17, %v3572_v25 }
 0x63f   : > { %v3593_v30 = vadd.f32 %v3591_v16, %v3573_v21  ;;  %v3606_v41 = vmul.f32 %v4190_v27, %v3592_v28 }
 0x641   : > { %v3607_v31 = vmul.f32 %v3603_v29, %v3593_v30  ;;  %v3609_v33 = vsel %vm3608_vm7, %v3606_v41, 0.0 }
 0x643   : > { %v3610_v34 = vsel %vm3608_vm7, %v3607_v31, 0.0 }
 0x644   : > { %v3611_v32 = vadd.f32 %v3610_v34, %v3609_v33 }
 0x646   : > { %3612 = vadd.xlane.f32.xlu0 %v3611_v32 }
 0x6cf   : > { %v3613_v35 = vpop.xlane.xlu0 %3612 }
 0x6d0   : > { %v3614_v36 = vrot.slane %v3613_v35, 4 }
 0x6d2   : > { %v3615_v37 = vadd.f32 %v3614_v36, %v3613_v35 }
 0x6d4   : > { %v3616_v38 = vrot.slane %v3615_v37, 2 }
 0x6d6   : > { %v3617_v39 = vadd.f32 %v3616_v38, %v3615_v37 }
 0x6d8   : > { %v3618_v40 = vrot.slane %v3617_v39, 1 }
 0x6da   : > { %v3619_v42 = vadd.f32 %v3618_v40, %v3617_v39 }
 0x6dc   : > { %4194 = vpush %v3619_v42 }
 0x6dd   : > { %4196 = vpush %v3621_v43 }
 0x70d   : > { %s4195_s13 = spop %4194 }
 0x70e   : > { %s4197_s14 = spop %4196 }
 0x70f   : > { %s3623_s16 = sadd.f32 %s4197_s14, %s4195_s13 }
 0x711   : > { %s3624_s15 = ssub.f32 0.0, %s3623_s16 }
 0x713   : > { %v3625_v44 = vstv %s3624_s15 }
 0x714   : > { %v3626_v45 = vmul.f32 1.442695, %v3625_v44 }
 0x716   : > { %4712 = vpow2.f32 %v3626_v45 }
 0x723   : > { %v4713_v46 = vpop.eup %4712 }
 0x724   : > { %4198 = vpush %v4713_v46 }
 0x755   : > { %s4199_s17 = spop %4198 }
 0x756   : > { %s3629_s18 = sadd.f32 1.0, %s4199_s17 }
 0x758   : > { %v3630_v1 = vstv %s3629_s18 }
 0x759   : > { %4714 = vrcp.f32 %v3630_v1 }
 0x766   : > { %v4715_v48 = vpop.eup %4714 }
 0x767   : > { %4200 = vpush %v4715_v48 }
 0x798   : > { %s4201_s23 = spop %4200 }
 0x799   : > { %v3633_v49 = vstv %s4201_s23 }
 0x79a   : > { %3635 = vst.msk [vmem:[%s399_s22] sm:$0x1] %vm3634_vm8, %v3633_v49 }
 0x79b PF: > { %s24_s19 = sadd.s32 1, %s4752_s19  }
 0x79c   : > { %p21_p1 = scmp.ge.s32.totalorder %s24_s19, 4  }
 0x79e   :  { %23 = sbr.rel (!%p21_p1) target bundleno = 4 (0x4), region = 111 }
 0x7a3   :  { %3653 = vsyncpa [#allocation7], 1 }
 0x7a4   :  { %3655 = vsyncpa [#allocation7 + $0x1], 1 }

</bundles_post_ra>
